<compile_context>
chip_gen: v7x
topology: tpu7x:2x2x1
jax: 0.10.0
libtpu: 0.0.40
codegen_flags: <defaults>
</compile_context>

<pallas_src>
import functools

import jax
import jax.numpy as jnp
from jax import lax
from jax.experimental import pallas as pl
from jax.experimental.pallas import tpu as pltpu


# ----------------------------------------------------------------------------
# Kernel 1: tiled matmul + bias  (used for ConvTranspose2d(k=2, s=2))
# ----------------------------------------------------------------------------
def _matmul_bias_kernel(x_ref, w_ref, b_ref, o_ref):
    acc = jnp.dot(x_ref[...], w_ref[...], preferred_element_type=jnp.float32)
    o_ref[...] = (acc + b_ref[...]).astype(o_ref.dtype)


def matmul_bias(x, w, b, out_dtype=jnp.float32, tm=512):
    """(M,K) @ (K,Nf) + b, row-tiled, ragged last tile masked by Pallas."""
    M, K = x.shape
    _, Nf = w.shape
    tm = min(tm, M)
    return pl.pallas_call(
        _matmul_bias_kernel,
        out_shape=jax.ShapeDtypeStruct((M, Nf), out_dtype),
        grid_spec=pltpu.PrefetchScalarGridSpec(
            num_scalar_prefetch=0,
            grid=(pl.cdiv(M, tm),),
            in_specs=[
                pl.BlockSpec((tm, K), lambda i: (i, 0)),
                pl.BlockSpec((K, Nf), lambda i: (0, 0)),
                pl.BlockSpec((1, Nf), lambda i: (0, 0)),
            ],
            out_specs=pl.BlockSpec((tm, Nf), lambda i: (i, 0)),
        ),
        compiler_params=pltpu.CompilerParams(
            dimension_semantics=("parallel",)),
    )(x, w, b.reshape(1, Nf).astype(jnp.float32))


# ----------------------------------------------------------------------------
# Kernel 2: fused 3x3 conv (padding=1) + bias + per-row batch-stat partials.
# Grid = (N, H): each step produces one output image row from three padded
# input rows (selected with three shifted BlockSpec views of the same array),
# accumulating the 9 taps in VMEM — no im2col materialization in HBM.
# ----------------------------------------------------------------------------
def _conv3x3_stats_kernel(r0_ref, r1_ref, r2_ref, w_ref, b_ref, o_ref, s_ref):
    W = o_ref.shape[2]
    C = r0_ref.shape[3]
    Co = o_ref.shape[3]
    rows = (r0_ref[0, 0, :, :], r1_ref[0, 0, :, :], r2_ref[0, 0, :, :])
    w = w_ref[...]                                   # (9*C, Co) bf16

    acc = jnp.zeros((W, Co), jnp.float32)
    for dy in range(3):
        row = rows[dy]                               # (W+2, C)
        for dx in range(3):
            k = dy * 3 + dx
            acc = acc + jnp.dot(row[dx:dx + W, :], w[k * C:(k + 1) * C, :],
                                preferred_element_type=jnp.float32)
    acc = acc + b_ref[...]                           # (W, Co) f32

    o_ref[0, 0, :, :] = acc.astype(o_ref.dtype)
    s_ref[0, 0, 0:1, :] = jnp.sum(acc, axis=0, keepdims=True)
    s_ref[0, 0, 1:2, :] = jnp.sum(acc * acc, axis=0, keepdims=True)


def conv3x3_bias_stats(xp, wmat, bias, out_dtype=jnp.float32):
    """xp: (N, H+2, W+2, C) zero-padded NHWC (bf16). wmat: (9*C, Co) bf16.
    Returns conv output (N,H,W,Co) and per-row (sum, sumsq) partials."""
    N, Hp, Wp, C = xp.shape
    H, W = Hp - 2, Wp - 2
    Co = wmat.shape[1]

    def row_spec(dy):
        return pl.BlockSpec((1, 1, Wp, C),
                            lambda n, h, dy=dy: (n, h + dy, 0, 0))

    return pl.pallas_call(
        _conv3x3_stats_kernel,
        out_shape=(jax.ShapeDtypeStruct((N, H, W, Co), out_dtype),
                   jax.ShapeDtypeStruct((N, H, 2, Co), jnp.float32)),
        grid_spec=pltpu.PrefetchScalarGridSpec(
            num_scalar_prefetch=0,
            grid=(N, H),
            in_specs=[
                row_spec(0), row_spec(1), row_spec(2),
                pl.BlockSpec((9 * C, Co), lambda n, h: (0, 0)),
                pl.BlockSpec((1, Co), lambda n, h: (0, 0)),
            ],
            out_specs=[
                pl.BlockSpec((1, 1, W, Co), lambda n, h: (n, h, 0, 0)),
                pl.BlockSpec((1, 1, 2, Co), lambda n, h: (n, h, 0, 0)),
            ],
        ),
        compiler_params=pltpu.CompilerParams(
            dimension_semantics=("parallel", "parallel")),
    )(xp, xp, xp, wmat, bias.reshape(1, Co).astype(jnp.float32))


# ----------------------------------------------------------------------------
# Kernel 3a: BN-apply + ReLU, writing directly into the zero-padded NHWC
# layout consumed by the next conv (fuses F.pad -> one fewer HBM pass).
# ----------------------------------------------------------------------------
def _bn_relu_pad_kernel(c_ref, scale_ref, shift_ref, o_ref, *, W):
    hp = pl.program_id(1)
    Hp = pl.num_programs(1)
    C = o_ref.shape[3]
    interior = jnp.logical_and(hp > 0, hp < Hp - 1)

    @pl.when(interior)
    def _():
        y = c_ref[0, 0, :, :].astype(jnp.float32) * scale_ref[...] + shift_ref[...]
        y = jnp.maximum(y, 0.0).astype(o_ref.dtype)
        o_ref[0, 0, 0:1, :] = jnp.zeros((1, C), o_ref.dtype)
        o_ref[0, 0, 1:W + 1, :] = y
        o_ref[0, 0, W + 1:W + 2, :] = jnp.zeros((1, C), o_ref.dtype)

    @pl.when(jnp.logical_not(interior))
    def _():
        o_ref[...] = jnp.zeros_like(o_ref)


def bn_relu_pad(c, scale, shift, out_dtype=jnp.bfloat16):
    N, H, W, C = c.shape
    kernel = functools.partial(_bn_relu_pad_kernel, W=W)
    return pl.pallas_call(
        kernel,
        out_shape=jax.ShapeDtypeStruct((N, H + 2, W + 2, C), out_dtype),
        grid_spec=pltpu.PrefetchScalarGridSpec(
            num_scalar_prefetch=0,
            grid=(N, H + 2),
            in_specs=[
                pl.BlockSpec((1, 1, W, C),
                             lambda n, hp: (n, jnp.clip(hp - 1, 0, H - 1), 0, 0)),
                pl.BlockSpec((1, C), lambda n, hp: (0, 0)),
                pl.BlockSpec((1, C), lambda n, hp: (0, 0)),
            ],
            out_specs=pl.BlockSpec((1, 1, W + 2, C), lambda n, hp: (n, hp, 0, 0)),
        ),
        compiler_params=pltpu.CompilerParams(
            dimension_semantics=("parallel", "parallel")),
    )(c, scale.reshape(1, C), shift.reshape(1, C))


# ----------------------------------------------------------------------------
# Kernel 3b: BN-apply + ReLU on flattened (pixels, channels), row-tiled.
# ----------------------------------------------------------------------------
def _bn_relu2d_kernel(c_ref, scale_ref, shift_ref, o_ref):
    y = c_ref[...].astype(jnp.float32) * scale_ref[...] + shift_ref[...]
    o_ref[...] = jnp.maximum(y, 0.0).astype(o_ref.dtype)


def bn_relu_2d(c, scale, shift, out_dtype=jnp.float32, tm=512):
    M, C = c.shape
    tm = min(tm, M)
    return pl.pallas_call(
        _bn_relu2d_kernel,
        out_shape=jax.ShapeDtypeStruct((M, C), out_dtype),
        grid_spec=pltpu.PrefetchScalarGridSpec(
            num_scalar_prefetch=0,
            grid=(pl.cdiv(M, tm),),
            in_specs=[
                pl.BlockSpec((tm, C), lambda i: (i, 0)),
                pl.BlockSpec((1, C), lambda i: (0, 0)),
                pl.BlockSpec((1, C), lambda i: (0, 0)),
            ],
            out_specs=pl.BlockSpec((tm, C), lambda i: (i, 0)),
        ),
        compiler_params=pltpu.CompilerParams(
            dimension_semantics=("parallel",)),
    )(c, scale.reshape(1, C), shift.reshape(1, C))


# ----------------------------------------------------------------------------
# Tiny JAX glue
# ----------------------------------------------------------------------------
def _bn_affine(stats, npix, gamma, beta, eps=1e-5):
    """Reduce per-row (sum, sumsq) partials -> BN scale/shift (train mode)."""
    s = jnp.sum(stats, axis=(0, 1))                  # (2, C)
    mean = s[0] / npix
    var = s[1] / npix - mean * mean                  # biased variance
    inv = lax.rsqrt(var + eps)
    scale = gamma * inv
    shift = beta - mean * scale
    return scale, shift


def init_params(key, in_ch, out_ch):
    ks = jax.random.split(key, 6)
    half = in_ch // 2
    p = {}
    # ConvTranspose2d weight layout (PyTorch): (in_ch, out_ch, kH, kW)
    p["wt"] = jax.random.normal(ks[0], (in_ch, half, 2, 2), jnp.float32) * 0.1
    p["bt"] = jax.random.normal(ks[1], (half,), jnp.float32) * 0.1
    # Conv2d weight layout (PyTorch): (out_ch, in_ch, kH, kW)
    p["w1"] = jax.random.normal(ks[2], (out_ch, in_ch, 3, 3), jnp.float32) * 0.1
    p["b1"] = jax.random.normal(ks[3], (out_ch,), jnp.float32) * 0.1
    p["w2"] = jax.random.normal(ks[4], (out_ch, out_ch, 3, 3), jnp.float32) * 0.1
    p["b2"] = jax.random.normal(ks[5], (out_ch,), jnp.float32) * 0.1
    # Single shared BatchNorm2d(out_ch) instance (used twice in the Sequential)
    p["gamma"] = jnp.ones((out_ch,), jnp.float32)
    p["beta"] = jnp.zeros((out_ch,), jnp.float32)
    return p


def up_forward(x1, x2, p):
    """Forward of `Up` (bilinear=False). x1, x2 are NCHW; output is NCHW f32."""
    N, Cin, Hin, Win = x1.shape
    half = Cin // 2
    out_ch = p["w1"].shape[0]

    # ---- ConvTranspose2d(Cin, Cin//2, k=2, s=2) as one MXU matmul ----------
    # out[n, co, 2i+a, 2j+b] = sum_ci x1[n,ci,i,j] * wt[ci,co,a,b] + bt[co]
    x1_rows = jnp.transpose(x1, (0, 2, 3, 1)).reshape(N * Hin * Win, Cin)
    y = matmul_bias(x1_rows.astype(jnp.bfloat16),
                    p["wt"].reshape(Cin, half * 4).astype(jnp.bfloat16),
                    jnp.repeat(p["bt"], 4),
                    out_dtype=jnp.bfloat16)           # (N*Hin*Win, half*4)
    # TODO(synk): emit y directly in the interleaved layout from the kernel to
    # drop this XLA transpose/pad/concat pass over the upsampled activation.
    y = y.reshape(N, Hin, Win, half, 2, 2)
    y = jnp.transpose(y, (0, 1, 4, 2, 5, 3)).reshape(N, 2 * Hin, 2 * Win, half)

    # ---- F.pad to x2 spatial size, channel concat (bf16 layout glue) -------
    x2n = jnp.transpose(x2, (0, 2, 3, 1)).astype(jnp.bfloat16)
    dh = x2n.shape[1] - y.shape[1]
    dw = x2n.shape[2] - y.shape[2]
    y = jnp.pad(y, ((0, 0), (dh // 2, dh - dh // 2),
                    (dw // 2, dw - dw // 2), (0, 0)))
    x = jnp.concatenate([x2n, y], axis=-1)            # (N, H, W, Cin) bf16
    Nb, H, W, C = x.shape
    npix = Nb * H * W

    # ---- DoubleConv stage 1: conv3x3 + bias + BN-stat partials -------------
    xp = jnp.pad(x, ((0, 0), (1, 1), (1, 1), (0, 0)))
    w1m = jnp.transpose(p["w1"], (2, 3, 1, 0)).reshape(9 * C, out_ch)
    c1, s1 = conv3x3_bias_stats(xp, w1m.astype(jnp.bfloat16), p["b1"])
    scale1, shift1 = _bn_affine(s1, npix, p["gamma"], p["beta"])
    # BN + ReLU fused with the zero-padding needed by conv2's input
    a1p = bn_relu_pad(c1, scale1, shift1, out_dtype=jnp.bfloat16)

    # ---- DoubleConv stage 2 -------------------------------------------------
    w2m = jnp.transpose(p["w2"], (2, 3, 1, 0)).reshape(9 * out_ch, out_ch)
    c2, s2 = conv3x3_bias_stats(a1p, w2m.astype(jnp.bfloat16), p["b2"])
    scale2, shift2 = _bn_affine(s2, npix, p["gamma"], p["beta"])
    a2 = bn_relu_2d(c2.reshape(npix, out_ch), scale2, shift2,
                    out_dtype=jnp.float32)

    return jnp.transpose(a2.reshape(Nb, H, W, out_ch), (0, 3, 1, 2))


# ----------------------------------------------------------------------------
# Pure-JAX reference. quantize=True mirrors the kernel's bf16 casts at each
# matmul boundary (f32 math otherwise) for a tight structural check;
# quantize=False is the true-f32 PyTorch semantics (loose check, since the
# bf16 inputs in the kernel introduce ~1% deviation).
# ----------------------------------------------------------------------------
def ref_forward(x1, x2, p, quantize=True):
    if quantize:
        q = lambda t: t.astype(jnp.bfloat16).astype(jnp.float32)
    else:
        q = lambda t: t

    N, Cin, Hin, Win = x1.shape
    half = Cin // 2
    t = jnp.einsum("ncij,cdab->ndiajb", q(x1), q(p["wt"]),
                   precision=lax.Precision.HIGHEST)
    up = t.reshape(N, half, 2 * Hin, 2 * Win) + p["bt"][None, :, None, None]
    up = q(up)
    dh = x2.shape[2] - up.shape[2]
    dw = x2.shape[3] - up.shape[3]
    up = jnp.pad(up, ((0, 0), (0, 0),
                      (dh // 2, dh - dh // 2), (dw // 2, dw - dw // 2)))
    x = jnp.concatenate([q(x2), up], axis=1)

    def conv3(xx, w, b):
        return lax.conv_general_dilated(
            q(xx), q(w), (1, 1), ((1, 1), (1, 1)),
            dimension_numbers=("NCHW", "OIHW", "NCHW"),
            precision=lax.Precision.HIGHEST) + b[None, :, None, None]

    def bn_relu(xx, g, bb, eps=1e-5):
        m = jnp.mean(xx, axis=(0, 2, 3), keepdims=True)
        v = jnp.mean((xx - m) ** 2, axis=(0, 2, 3), keepdims=True)
        y = (xx - m) / jnp.sqrt(v + eps) * g[None, :, None, None] \
            + bb[None, :, None, None]
        return jnp.maximum(y, 0.0)

    h = bn_relu(conv3(x, p["w1"], p["b1"]), p["gamma"], p["beta"])
    h = bn_relu(conv3(h, p["w2"], p["b2"]), p["gamma"], p["beta"])
    return h


if __name__ == "__main__":
    key = jax.random.PRNGKey(0)
    k1, k2, kp = jax.random.split(key, 3)

    in_ch, out_ch = 8, 4
    N, Hin, Win = 2, 8, 8
    # x1: coarse feature map; x2: skip connection (in_ch//2 channels, 2x spatial)
    x1 = jax.random.normal(k1, (N, in_ch, Hin, Win), jnp.float32)
    x2 = jax.random.normal(k2, (N, in_ch // 2, 2 * Hin, 2 * Win), jnp.float32)
    params = init_params(kp, in_ch, out_ch)

    up_fn = jax.jit(up_forward)
    out = jax.block_until_ready(up_fn(x1, x2, params))
    assert out.shape == (N, out_ch, 2 * Hin, 2 * Win), out.shape

    # Tight check vs. a bf16-quantization-matched f32 reference.
    ref_q = jax.block_until_ready(ref_forward(x1, x2, params, quantize=True))
    err_q = float(jnp.max(jnp.abs(out - ref_q)))
    assert jnp.allclose(out, ref_q, rtol=1e-2, atol=1e-2), err_q

    # Loose sanity check vs. the pure-f32 reference (bf16 inputs ~1% noise).
    ref_f = jax.block_until_ready(ref_forward(x1, x2, params, quantize=False))
    err_f = float(jnp.max(jnp.abs(out - ref_f)))
    assert err_f < 1e-1, err_f

    print("KERNEL_OK")
</pallas_src>

<mosaic_0001>
module attributes {stable_mosaic.version = 11 : i64} {
  func.func @_matmul_bias_kernel(%arg0: i32, %arg1: memref<128x8xbf16, #tpu.memory_space<vmem>>, %arg2: memref<8x16xbf16, #tpu.memory_space<vmem>>, %arg3: memref<1x16xf32, #tpu.memory_space<vmem>>, %arg4: memref<128x16xbf16, #tpu.memory_space<vmem>>) attributes {dimension_semantics = [#tpu.dimension_semantics<parallel>], iteration_bounds = array<i64: 1>, scalar_prefetch = 0 : i64, scratch_operands = 0 : i64, tpu.core_type = #tpu.core_type<tc>, window_params = [{transform_indices = @transform_0, window_bounds = array<i64: 128, 8>}, {pipeline_mode = #tpu.pipeline_mode<synchronous>, transform_indices = @transform_1, window_bounds = array<i64: 8, 16>}, {pipeline_mode = #tpu.pipeline_mode<synchronous>, transform_indices = @transform_2, window_bounds = array<i64: 1, 16>}, {transform_indices = @transform_3, window_bounds = array<i64: 128, 16>}]} {
    %c0 = arith.constant 0 : index
    %c0_0 = arith.constant 0 : index
    %0 = vector.load %arg1[%c0, %c0_0] : memref<128x8xbf16, #tpu.memory_space<vmem>>, vector<128x8xbf16>
    %c0_1 = arith.constant 0 : index
    %c0_2 = arith.constant 0 : index
    %1 = vector.load %arg2[%c0_1, %c0_2] : memref<8x16xbf16, #tpu.memory_space<vmem>>, vector<8x16xbf16>
    %cst = arith.constant dense<0.000000e+00> : vector<128x16xf32>
    %2 = tpu.matmul %0, %1, %cst {dimension_numbers = #tpu.dot_dimension_numbers<[1], [0], [0], [1], [0, 0, 1, 1], [], []>} : vector<128x8xbf16>, vector<8x16xbf16>, vector<128x16xf32> -> vector<128x16xf32>
    %c0_3 = arith.constant 0 : index
    %c0_4 = arith.constant 0 : index
    %3 = vector.load %arg3[%c0_3, %c0_4] : memref<1x16xf32, #tpu.memory_space<vmem>>, vector<1x16xf32>
    %4 = vector.broadcast %3 : vector<1x16xf32> to vector<128x16xf32>
    %5 = arith.addf %2, %4 : vector<128x16xf32>
    %6 = arith.truncf %5 : vector<128x16xf32> to vector<128x16xbf16>
    %c0_5 = arith.constant 0 : index
    %c0_6 = arith.constant 0 : index
    %7 = vector.load %arg4[%c0_5, %c0_6] : memref<128x16xbf16, #tpu.memory_space<vmem>>, vector<128x16xbf16>
    tpu.vector_store %arg4[%c0_5, %c0_6], %6 {strides = array<i32>} : memref<128x16xbf16, #tpu.memory_space<vmem>>, vector<128x16xbf16>,
    return
  }
  func.func @transform_0(%arg0: i32) -> (i32, i32) {
    %c0_i32 = arith.constant 0 : i32
    %c0_i32_0 = arith.constant 0 : i32
    return %arg0, %c0_i32 : i32, i32
  }
  func.func @transform_1(%arg0: i32) -> (i32, i32) {
    %c0_i32 = arith.constant 0 : i32
    %c0_i32_0 = arith.constant 0 : i32
    %c0_i32_1 = arith.constant 0 : i32
    return %c0_i32, %c0_i32_0 : i32, i32
  }
  func.func @transform_2(%arg0: i32) -> (i32, i32) {
    %c0_i32 = arith.constant 0 : i32
    %c0_i32_0 = arith.constant 0 : i32
    %c0_i32_1 = arith.constant 0 : i32
    return %c0_i32, %c0_i32_0 : i32, i32
  }
  func.func @transform_3(%arg0: i32) -> (i32, i32) {
    %c0_i32 = arith.constant 0 : i32
    %c0_i32_0 = arith.constant 0 : i32
    return %arg0, %c0_i32 : i32, i32
  }
}

module attributes {stable_mosaic.version = 11 : i64} {
  func.func @_conv3x3_stats_kernel(%arg0: i32, %arg1: i32, %arg2: memref<1x1x18x8xbf16, #tpu.memory_space<vmem>>, %arg3: memref<1x1x18x8xbf16, #tpu.memory_space<vmem>>, %arg4: memref<1x1x18x8xbf16, #tpu.memory_space<vmem>>, %arg5: memref<72x4xbf16, #tpu.memory_space<vmem>>, %arg6: memref<1x4xf32, #tpu.memory_space<vmem>>, %arg7: memref<1x1x16x4xf32, #tpu.memory_space<vmem>>, %arg8: memref<1x1x2x4xf32, #tpu.memory_space<vmem>>) attributes {dimension_semantics = [#tpu.dimension_semantics<parallel>, #tpu.dimension_semantics<parallel>], iteration_bounds = array<i64: 2, 16>, scalar_prefetch = 0 : i64, scratch_operands = 0 : i64, tpu.core_type = #tpu.core_type<tc>, window_params = [{transform_indices = @transform_0, window_bounds = array<i64: 1, 1, 18, 8>}, {transform_indices = @transform_1, window_bounds = array<i64: 1, 1, 18, 8>}, {transform_indices = @transform_2, window_bounds = array<i64: 1, 1, 18, 8>}, {pipeline_mode = #tpu.pipeline_mode<synchronous>, transform_indices = @transform_3, window_bounds = array<i64: 72, 4>}, {pipeline_mode = #tpu.pipeline_mode<synchronous>, transform_indices = @transform_4, window_bounds = array<i64: 1, 4>}, {transform_indices = @transform_5, window_bounds = array<i64: 1, 1, 16, 4>}, {transform_indices = @transform_6, window_bounds = array<i64: 1, 1, 2, 4>}]} {
    %c0 = arith.constant 0 : index
    %c0_0 = arith.constant 0 : index
    %c0_1 = arith.constant 0 : index
    %c0_2 = arith.constant 0 : index
    %0 = vector.load %arg2[%c0, %c0_0, %c0_1, %c0_2] : memref<1x1x18x8xbf16, #tpu.memory_space<vmem>>, vector<1x1x18x8xbf16>
    %1 = vector.shape_cast %0 : vector<1x1x18x8xbf16> to vector<18x8xbf16>
    %c0_3 = arith.constant 0 : index
    %c0_4 = arith.constant 0 : index
    %c0_5 = arith.constant 0 : index
    %c0_6 = arith.constant 0 : index
    %2 = vector.load %arg3[%c0_3, %c0_4, %c0_5, %c0_6] : memref<1x1x18x8xbf16, #tpu.memory_space<vmem>>, vector<1x1x18x8xbf16>
    %3 = vector.shape_cast %2 : vector<1x1x18x8xbf16> to vector<18x8xbf16>
    %c0_7 = arith.constant 0 : index
    %c0_8 = arith.constant 0 : index
    %c0_9 = arith.constant 0 : index
    %c0_10 = arith.constant 0 : index
    %4 = vector.load %arg4[%c0_7, %c0_8, %c0_9, %c0_10] : memref<1x1x18x8xbf16, #tpu.memory_space<vmem>>, vector<1x1x18x8xbf16>
    %5 = vector.shape_cast %4 : vector<1x1x18x8xbf16> to vector<18x8xbf16>
    %c0_11 = arith.constant 0 : index
    %c0_12 = arith.constant 0 : index
    %6 = vector.load %arg5[%c0_11, %c0_12] : memref<72x4xbf16, #tpu.memory_space<vmem>>, vector<72x4xbf16>
    %cst = arith.constant 0.000000e+00 : f32
    %7 = vector.broadcast %cst : f32 to vector<16x4xf32>
    %8 = vector.extract_strided_slice %1 {offsets = [0, 0], sizes = [16, 8], strides = [1, 1]} : vector<18x8xbf16> to vector<16x8xbf16>
    %9 = vector.extract_strided_slice %6 {offsets = [0, 0], sizes = [8, 4], strides = [1, 1]} : vector<72x4xbf16> to vector<8x4xbf16>
    %cst_13 = arith.constant dense<0.000000e+00> : vector<16x4xf32>
    %10 = tpu.matmul %8, %9, %cst_13 {dimension_numbers = #tpu.dot_dimension_numbers<[1], [0], [0], [1], [0, 0, 1, 1], [], []>} : vector<16x8xbf16>, vector<8x4xbf16>, vector<16x4xf32> -> vector<16x4xf32>
    %11 = arith.addf %7, %10 : vector<16x4xf32>
    %12 = vector.extract_strided_slice %1 {offsets = [1, 0], sizes = [16, 8], strides = [1, 1]} : vector<18x8xbf16> to vector<16x8xbf16>
    %13 = vector.extract_strided_slice %6 {offsets = [8, 0], sizes = [8, 4], strides = [1, 1]} : vector<72x4xbf16> to vector<8x4xbf16>
    %cst_14 = arith.constant dense<0.000000e+00> : vector<16x4xf32>
    %14 = tpu.matmul %12, %13, %cst_14 {dimension_numbers = #tpu.dot_dimension_numbers<[1], [0], [0], [1], [0, 0, 1, 1], [], []>} : vector<16x8xbf16>, vector<8x4xbf16>, vector<16x4xf32> -> vector<16x4xf32>
    %15 = arith.addf %11, %14 : vector<16x4xf32>
    %16 = vector.extract_strided_slice %1 {offsets = [2, 0], sizes = [16, 8], strides = [1, 1]} : vector<18x8xbf16> to vector<16x8xbf16>
    %17 = vector.extract_strided_slice %6 {offsets = [16, 0], sizes = [8, 4], strides = [1, 1]} : vector<72x4xbf16> to vector<8x4xbf16>
    %cst_15 = arith.constant dense<0.000000e+00> : vector<16x4xf32>
    %18 = tpu.matmul %16, %17, %cst_15 {dimension_numbers = #tpu.dot_dimension_numbers<[1], [0], [0], [1], [0, 0, 1, 1], [], []>} : vector<16x8xbf16>, vector<8x4xbf16>, vector<16x4xf32> -> vector<16x4xf32>
    %19 = arith.addf %15, %18 : vector<16x4xf32>
    %20 = vector.extract_strided_slice %3 {offsets = [0, 0], sizes = [16, 8], strides = [1, 1]} : vector<18x8xbf16> to vector<16x8xbf16>
    %21 = vector.extract_strided_slice %6 {offsets = [24, 0], sizes = [8, 4], strides = [1, 1]} : vector<72x4xbf16> to vector<8x4xbf16>
    %cst_16 = arith.constant dense<0.000000e+00> : vector<16x4xf32>
    %22 = tpu.matmul %20, %21, %cst_16 {dimension_numbers = #tpu.dot_dimension_numbers<[1], [0], [0], [1], [0, 0, 1, 1], [], []>} : vector<16x8xbf16>, vector<8x4xbf16>, vector<16x4xf32> -> vector<16x4xf32>
    %23 = arith.addf %19, %22 : vector<16x4xf32>
    %24 = vector.extract_strided_slice %3 {offsets = [1, 0], sizes = [16, 8], strides = [1, 1]} : vector<18x8xbf16> to vector<16x8xbf16>
    %25 = vector.extract_strided_slice %6 {offsets = [32, 0], sizes = [8, 4], strides = [1, 1]} : vector<72x4xbf16> to vector<8x4xbf16>
    %cst_17 = arith.constant dense<0.000000e+00> : vector<16x4xf32>
    %26 = tpu.matmul %24, %25, %cst_17 {dimension_numbers = #tpu.dot_dimension_numbers<[1], [0], [0], [1], [0, 0, 1, 1], [], []>} : vector<16x8xbf16>, vector<8x4xbf16>, vector<16x4xf32> -> vector<16x4xf32>
    %27 = arith.addf %23, %26 : vector<16x4xf32>
    %28 = vector.extract_strided_slice %3 {offsets = [2, 0], sizes = [16, 8], strides = [1, 1]} : vector<18x8xbf16> to vector<16x8xbf16>
    %29 = vector.extract_strided_slice %6 {offsets = [40, 0], sizes = [8, 4], strides = [1, 1]} : vector<72x4xbf16> to vector<8x4xbf16>
    %cst_18 = arith.constant dense<0.000000e+00> : vector<16x4xf32>
    %30 = tpu.matmul %28, %29, %cst_18 {dimension_numbers = #tpu.dot_dimension_numbers<[1], [0], [0], [1], [0, 0, 1, 1], [], []>} : vector<16x8xbf16>, vector<8x4xbf16>, vector<16x4xf32> -> vector<16x4xf32>
    %31 = arith.addf %27, %30 : vector<16x4xf32>
    %32 = vector.extract_strided_slice %5 {offsets = [0, 0], sizes = [16, 8], strides = [1, 1]} : vector<18x8xbf16> to vector<16x8xbf16>
    %33 = vector.extract_strided_slice %6 {offsets = [48, 0], sizes = [8, 4], strides = [1, 1]} : vector<72x4xbf16> to vector<8x4xbf16>
    %cst_19 = arith.constant dense<0.000000e+00> : vector<16x4xf32>
    %34 = tpu.matmul %32, %33, %cst_19 {dimension_numbers = #tpu.dot_dimension_numbers<[1], [0], [0], [1], [0, 0, 1, 1], [], []>} : vector<16x8xbf16>, vector<8x4xbf16>, vector<16x4xf32> -> vector<16x4xf32>
    %35 = arith.addf %31, %34 : vector<16x4xf32>
    %36 = vector.extract_strided_slice %5 {offsets = [1, 0], sizes = [16, 8], strides = [1, 1]} : vector<18x8xbf16> to vector<16x8xbf16>
    %37 = vector.extract_strided_slice %6 {offsets = [56, 0], sizes = [8, 4], strides = [1, 1]} : vector<72x4xbf16> to vector<8x4xbf16>
    %cst_20 = arith.constant dense<0.000000e+00> : vector<16x4xf32>
    %38 = tpu.matmul %36, %37, %cst_20 {dimension_numbers = #tpu.dot_dimension_numbers<[1], [0], [0], [1], [0, 0, 1, 1], [], []>} : vector<16x8xbf16>, vector<8x4xbf16>, vector<16x4xf32> -> vector<16x4xf32>
    %39 = arith.addf %35, %38 : vector<16x4xf32>
    %40 = vector.extract_strided_slice %5 {offsets = [2, 0], sizes = [16, 8], strides = [1, 1]} : vector<18x8xbf16> to vector<16x8xbf16>
    %41 = vector.extract_strided_slice %6 {offsets = [64, 0], sizes = [8, 4], strides = [1, 1]} : vector<72x4xbf16> to vector<8x4xbf16>
    %cst_21 = arith.constant dense<0.000000e+00> : vector<16x4xf32>
    %42 = tpu.matmul %40, %41, %cst_21 {dimension_numbers = #tpu.dot_dimension_numbers<[1], [0], [0], [1], [0, 0, 1, 1], [], []>} : vector<16x8xbf16>, vector<8x4xbf16>, vector<16x4xf32> -> vector<16x4xf32>
    %43 = arith.addf %39, %42 : vector<16x4xf32>
    %c0_22 = arith.constant 0 : index
    %c0_23 = arith.constant 0 : index
    %44 = vector.load %arg6[%c0_22, %c0_23] : memref<1x4xf32, #tpu.memory_space<vmem>>, vector<1x4xf32>
    %45 = vector.broadcast %44 : vector<1x4xf32> to vector<16x4xf32>
    %46 = arith.addf %43, %45 : vector<16x4xf32>
    %c0_24 = arith.constant 0 : index
    %c0_25 = arith.constant 0 : index
    %c0_26 = arith.constant 0 : index
    %c0_27 = arith.constant 0 : index
    %47 = vector.load %arg7[%c0_24, %c0_25, %c0_26, %c0_27] : memref<1x1x16x4xf32, #tpu.memory_space<vmem>>, vector<1x1x16x4xf32>
    %48 = vector.shape_cast %47 : vector<1x1x16x4xf32> to vector<16x4xf32>
    %49 = vector.shape_cast %46 : vector<16x4xf32> to vector<1x1x16x4xf32>
    tpu.vector_store %arg7[%c0_24, %c0_25, %c0_26, %c0_27], %49 {strides = array<i32>} : memref<1x1x16x4xf32, #tpu.memory_space<vmem>>, vector<1x1x16x4xf32>,
    %cst_28 = arith.constant dense<0.000000e+00> : vector<4xf32>
    %50 = vector.multi_reduction <add>, %46, %cst_28 [0] : vector<16x4xf32> to vector<4xf32>
    %51 = vector.shape_cast %50 : vector<4xf32> to vector<1x4xf32>
    %c0_29 = arith.constant 0 : index
    %c0_30 = arith.constant 0 : index
    %c0_31 = arith.constant 0 : index
    %c0_32 = arith.constant 0 : index
    %52 = vector.load %arg8[%c0_29, %c0_30, %c0_31, %c0_32] : memref<1x1x2x4xf32, #tpu.memory_space<vmem>>, vector<1x1x1x4xf32>
    %53 = vector.shape_cast %52 : vector<1x1x1x4xf32> to vector<1x4xf32>
    %54 = vector.shape_cast %51 : vector<1x4xf32> to vector<1x1x1x4xf32>
    tpu.vector_store %arg8[%c0_29, %c0_30, %c0_31, %c0_32], %54 {strides = array<i32>} : memref<1x1x2x4xf32, #tpu.memory_space<vmem>>, vector<1x1x1x4xf32>,
    %55 = arith.mulf %46, %46 : vector<16x4xf32>
    %cst_33 = arith.constant dense<0.000000e+00> : vector<4xf32>
    %56 = vector.multi_reduction <add>, %55, %cst_33 [0] : vector<16x4xf32> to vector<4xf32>
    %57 = vector.shape_cast %56 : vector<4xf32> to vector<1x4xf32>
    %c0_34 = arith.constant 0 : index
    %c0_35 = arith.constant 0 : index
    %c1 = arith.constant 1 : index
    %c0_36 = arith.constant 0 : index
    %58 = vector.load %arg8[%c0_34, %c0_35, %c1, %c0_36] : memref<1x1x2x4xf32, #tpu.memory_space<vmem>>, vector<1x1x1x4xf32>
    %59 = vector.shape_cast %58 : vector<1x1x1x4xf32> to vector<1x4xf32>
    %60 = vector.shape_cast %57 : vector<1x4xf32> to vector<1x1x1x4xf32>
    tpu.vector_store %arg8[%c0_34, %c0_35, %c1, %c0_36], %60 {strides = array<i32>} : memref<1x1x2x4xf32, #tpu.memory_space<vmem>>, vector<1x1x1x4xf32>,
    return
  }
  func.func @transform_0(%arg0: i32, %arg1: i32) -> (i32, i32, i32, i32) {
    %c0_i32 = arith.constant 0 : i32
    %0 = arith.addi %arg1, %c0_i32 : i32
    %c0_i32_0 = arith.constant 0 : i32
    %c0_i32_1 = arith.constant 0 : i32
    %c0_i32_2 = arith.constant 0 : i32
    return %arg0, %0, %c0_i32_0, %c0_i32_1 : i32, i32, i32, i32
  }
  func.func @transform_1(%arg0: i32, %arg1: i32) -> (i32, i32, i32, i32) {
    %c1_i32 = arith.constant 1 : i32
    %0 = arith.addi %arg1, %c1_i32 : i32
    %c0_i32 = arith.constant 0 : i32
    %c0_i32_0 = arith.constant 0 : i32
    %c0_i32_1 = arith.constant 0 : i32
    return %arg0, %0, %c0_i32, %c0_i32_0 : i32, i32, i32, i32
  }
  func.func @transform_2(%arg0: i32, %arg1: i32) -> (i32, i32, i32, i32) {
    %c2_i32 = arith.constant 2 : i32
    %0 = arith.addi %arg1, %c2_i32 : i32
    %c0_i32 = arith.constant 0 : i32
    %c0_i32_0 = arith.constant 0 : i32
    %c0_i32_1 = arith.constant 0 : i32
    return %arg0, %0, %c0_i32, %c0_i32_0 : i32, i32, i32, i32
  }
  func.func @transform_3(%arg0: i32, %arg1: i32) -> (i32, i32) {
    %c0_i32 = arith.constant 0 : i32
    %c0_i32_0 = arith.constant 0 : i32
    %c0_i32_1 = arith.constant 0 : i32
    return %c0_i32, %c0_i32_0 : i32, i32
  }
  func.func @transform_4(%arg0: i32, %arg1: i32) -> (i32, i32) {
    %c0_i32 = arith.constant 0 : i32
    %c0_i32_0 = arith.constant 0 : i32
    %c0_i32_1 = arith.constant 0 : i32
    return %c0_i32, %c0_i32_0 : i32, i32
  }
  func.func @transform_5(%arg0: i32, %arg1: i32) -> (i32, i32, i32, i32) {
    %c0_i32 = arith.constant 0 : i32
    %c0_i32_0 = arith.constant 0 : i32
    %c0_i32_1 = arith.constant 0 : i32
    return %arg0, %arg1, %c0_i32, %c0_i32_0 : i32, i32, i32, i32
  }
  func.func @transform_6(%arg0: i32, %arg1: i32) -> (i32, i32, i32, i32) {
    %c0_i32 = arith.constant 0 : i32
    %c0_i32_0 = arith.constant 0 : i32
    %c0_i32_1 = arith.constant 0 : i32
    return %arg0, %arg1, %c0_i32, %c0_i32_0 : i32, i32, i32, i32
  }
}

module attributes {stable_mosaic.version = 11 : i64} {
  func.func @_bn_relu_pad_kernel(%arg0: i32, %arg1: i32, %arg2: memref<1x1x16x4xf32, #tpu.memory_space<vmem>>, %arg3: memref<1x4xf32, #tpu.memory_space<vmem>>, %arg4: memref<1x4xf32, #tpu.memory_space<vmem>>, %arg5: memref<1x1x18x4xbf16, #tpu.memory_space<vmem>>) attributes {dimension_semantics = [#tpu.dimension_semantics<parallel>, #tpu.dimension_semantics<parallel>], iteration_bounds = array<i64: 2, 18>, scalar_prefetch = 0 : i64, scratch_operands = 0 : i64, tpu.core_type = #tpu.core_type<tc>, window_params = [{transform_indices = @transform_0, window_bounds = array<i64: 1, 1, 16, 4>}, {pipeline_mode = #tpu.pipeline_mode<synchronous>, transform_indices = @transform_1, window_bounds = array<i64: 1, 4>}, {pipeline_mode = #tpu.pipeline_mode<synchronous>, transform_indices = @transform_2, window_bounds = array<i64: 1, 4>}, {transform_indices = @transform_3, window_bounds = array<i64: 1, 1, 18, 4>}]} {
    %c0_i32 = arith.constant 0 : i32
    %0 = arith.cmpi sgt, %arg1, %c0_i32 : i32
    %c17_i32 = arith.constant 17 : i32
    %1 = arith.cmpi slt, %arg1, %c17_i32 : i32
    %2 = arith.andi %0, %1 : i1
    %3 = arith.extui %2 : i1 to i32
    %c0_i32_0 = arith.constant 0 : i32
    %4 = arith.cmpi ne, %3, %c0_i32_0 : i32
    scf.if %4 {
      %c0 = arith.constant 0 : index
      %c0_2 = arith.constant 0 : index
      %c0_3 = arith.constant 0 : index
      %c0_4 = arith.constant 0 : index
      %8 = vector.load %arg2[%c0, %c0_2, %c0_3, %c0_4] : memref<1x1x16x4xf32, #tpu.memory_space<vmem>>, vector<1x1x16x4xf32>
      %9 = vector.shape_cast %8 : vector<1x1x16x4xf32> to vector<16x4xf32>
      %c0_5 = arith.constant 0 : index
      %c0_6 = arith.constant 0 : index
      %10 = vector.load %arg3[%c0_5, %c0_6] : memref<1x4xf32, #tpu.memory_space<vmem>>, vector<1x4xf32>
      %11 = vector.broadcast %10 : vector<1x4xf32> to vector<16x4xf32>
      %12 = arith.mulf %9, %11 : vector<16x4xf32>
      %c0_7 = arith.constant 0 : index
      %c0_8 = arith.constant 0 : index
      %13 = vector.load %arg4[%c0_7, %c0_8] : memref<1x4xf32, #tpu.memory_space<vmem>>, vector<1x4xf32>
      %14 = vector.broadcast %13 : vector<1x4xf32> to vector<16x4xf32>
      %15 = arith.addf %12, %14 : vector<16x4xf32>
      %cst = arith.constant 0.000000e+00 : f32
      %16 = vector.broadcast %cst : f32 to vector<16x4xf32>
      %17 = arith.maximumf %15, %16 : vector<16x4xf32>
      %18 = arith.truncf %17 : vector<16x4xf32> to vector<16x4xbf16>
      %cst_9 = arith.constant 0.000000e+00 : bf16
      %19 = vector.broadcast %cst_9 : bf16 to vector<1x4xbf16>
      %c0_10 = arith.constant 0 : index
      %c0_11 = arith.constant 0 : index
      %c0_12 = arith.constant 0 : index
      %c0_13 = arith.constant 0 : index
      %20 = vector.load %arg5[%c0_10, %c0_11, %c0_12, %c0_13] : memref<1x1x18x4xbf16, #tpu.memory_space<vmem>>, vector<1x1x1x4xbf16>
      %21 = vector.shape_cast %20 : vector<1x1x1x4xbf16> to vector<1x4xbf16>
      %22 = vector.shape_cast %19 : vector<1x4xbf16> to vector<1x1x1x4xbf16>
      tpu.vector_store %arg5[%c0_10, %c0_11, %c0_12, %c0_13], %22 {strides = array<i32>} : memref<1x1x18x4xbf16, #tpu.memory_space<vmem>>, vector<1x1x1x4xbf16>,
      %c0_14 = arith.constant 0 : index
      %c0_15 = arith.constant 0 : index
      %c1 = arith.constant 1 : index
      %c0_16 = arith.constant 0 : index
      %23 = vector.load %arg5[%c0_14, %c0_15, %c1, %c0_16] : memref<1x1x18x4xbf16, #tpu.memory_space<vmem>>, vector<1x1x16x4xbf16>
      %24 = vector.shape_cast %23 : vector<1x1x16x4xbf16> to vector<16x4xbf16>
      %25 = vector.shape_cast %18 : vector<16x4xbf16> to vector<1x1x16x4xbf16>
      tpu.vector_store %arg5[%c0_14, %c0_15, %c1, %c0_16], %25 {strides = array<i32>} : memref<1x1x18x4xbf16, #tpu.memory_space<vmem>>, vector<1x1x16x4xbf16>,
      %cst_17 = arith.constant 0.000000e+00 : bf16
      %26 = vector.broadcast %cst_17 : bf16 to vector<1x4xbf16>
      %c0_18 = arith.constant 0 : index
      %c0_19 = arith.constant 0 : index
      %c17 = arith.constant 17 : index
      %c0_20 = arith.constant 0 : index
      %27 = vector.load %arg5[%c0_18, %c0_19, %c17, %c0_20] : memref<1x1x18x4xbf16, #tpu.memory_space<vmem>>, vector<1x1x1x4xbf16>
      %28 = vector.shape_cast %27 : vector<1x1x1x4xbf16> to vector<1x4xbf16>
      %29 = vector.shape_cast %26 : vector<1x4xbf16> to vector<1x1x1x4xbf16>
      tpu.vector_store %arg5[%c0_18, %c0_19, %c17, %c0_20], %29 {strides = array<i32>} : memref<1x1x18x4xbf16, #tpu.memory_space<vmem>>, vector<1x1x1x4xbf16>,
    } else {
    }
    %true = arith.constant true
    %5 = arith.xori %2, %true : i1
    %6 = arith.extui %5 : i1 to i32
    %c0_i32_1 = arith.constant 0 : i32
    %7 = arith.cmpi ne, %6, %c0_i32_1 : i32
    scf.if %7 {
      %cst = arith.constant 0.000000e+00 : bf16
      %8 = vector.broadcast %cst : bf16 to vector<1x1x18x4xbf16>
      %c0 = arith.constant 0 : index
      %c0_2 = arith.constant 0 : index
      %c0_3 = arith.constant 0 : index
      %c0_4 = arith.constant 0 : index
      %9 = vector.load %arg5[%c0, %c0_2, %c0_3, %c0_4] : memref<1x1x18x4xbf16, #tpu.memory_space<vmem>>, vector<1x1x18x4xbf16>
      tpu.vector_store %arg5[%c0, %c0_2, %c0_3, %c0_4], %8 {strides = array<i32>} : memref<1x1x18x4xbf16, #tpu.memory_space<vmem>>, vector<1x1x18x4xbf16>,
    } else {
    }
    return
  }
  func.func @transform_0(%arg0: i32, %arg1: i32) -> (i32, i32, i32, i32) {
    %c1_i32 = arith.constant 1 : i32
    %0 = arith.subi %arg1, %c1_i32 : i32
    %c0_i32 = arith.constant 0 : i32
    %c15_i32 = arith.constant 15 : i32
    %1 = arith.maxsi %c0_i32, %0 : i32
    %2 = arith.minsi %c15_i32, %1 : i32
    %c0_i32_0 = arith.constant 0 : i32
    %c0_i32_1 = arith.constant 0 : i32
    %c0_i32_2 = arith.constant 0 : i32
    return %arg0, %2, %c0_i32_0, %c0_i32_1 : i32, i32, i32, i32
  }
  func.func @transform_1(%arg0: i32, %arg1: i32) -> (i32, i32) {
    %c0_i32 = arith.constant 0 : i32
    %c0_i32_0 = arith.constant 0 : i32
    %c0_i32_1 = arith.constant 0 : i32
    return %c0_i32, %c0_i32_0 : i32, i32
  }
  func.func @transform_2(%arg0: i32, %arg1: i32) -> (i32, i32) {
    %c0_i32 = arith.constant 0 : i32
    %c0_i32_0 = arith.constant 0 : i32
    %c0_i32_1 = arith.constant 0 : i32
    return %c0_i32, %c0_i32_0 : i32, i32
  }
  func.func @transform_3(%arg0: i32, %arg1: i32) -> (i32, i32, i32, i32) {
    %c0_i32 = arith.constant 0 : i32
    %c0_i32_0 = arith.constant 0 : i32
    %c0_i32_1 = arith.constant 0 : i32
    return %arg0, %arg1, %c0_i32, %c0_i32_0 : i32, i32, i32, i32
  }
}

module attributes {stable_mosaic.version = 11 : i64} {
  func.func @_conv3x3_stats_kernel(%arg0: i32, %arg1: i32, %arg2: memref<1x1x18x4xbf16, #tpu.memory_space<vmem>>, %arg3: memref<1x1x18x4xbf16, #tpu.memory_space<vmem>>, %arg4: memref<1x1x18x4xbf16, #tpu.memory_space<vmem>>, %arg5: memref<36x4xbf16, #tpu.memory_space<vmem>>, %arg6: memref<1x4xf32, #tpu.memory_space<vmem>>, %arg7: memref<1x1x16x4xf32, #tpu.memory_space<vmem>>, %arg8: memref<1x1x2x4xf32, #tpu.memory_space<vmem>>) attributes {dimension_semantics = [#tpu.dimension_semantics<parallel>, #tpu.dimension_semantics<parallel>], iteration_bounds = array<i64: 2, 16>, scalar_prefetch = 0 : i64, scratch_operands = 0 : i64, tpu.core_type = #tpu.core_type<tc>, window_params = [{transform_indices = @transform_0, window_bounds = array<i64: 1, 1, 18, 4>}, {transform_indices = @transform_1, window_bounds = array<i64: 1, 1, 18, 4>}, {transform_indices = @transform_2, window_bounds = array<i64: 1, 1, 18, 4>}, {pipeline_mode = #tpu.pipeline_mode<synchronous>, transform_indices = @transform_3, window_bounds = array<i64: 36, 4>}, {pipeline_mode = #tpu.pipeline_mode<synchronous>, transform_indices = @transform_4, window_bounds = array<i64: 1, 4>}, {transform_indices = @transform_5, window_bounds = array<i64: 1, 1, 16, 4>}, {transform_indices = @transform_6, window_bounds = array<i64: 1, 1, 2, 4>}]} {
    %c0 = arith.constant 0 : index
    %c0_0 = arith.constant 0 : index
    %c0_1 = arith.constant 0 : index
    %c0_2 = arith.constant 0 : index
    %0 = vector.load %arg2[%c0, %c0_0, %c0_1, %c0_2] : memref<1x1x18x4xbf16, #tpu.memory_space<vmem>>, vector<1x1x18x4xbf16>
    %1 = vector.shape_cast %0 : vector<1x1x18x4xbf16> to vector<18x4xbf16>
    %c0_3 = arith.constant 0 : index
    %c0_4 = arith.constant 0 : index
    %c0_5 = arith.constant 0 : index
    %c0_6 = arith.constant 0 : index
    %2 = vector.load %arg3[%c0_3, %c0_4, %c0_5, %c0_6] : memref<1x1x18x4xbf16, #tpu.memory_space<vmem>>, vector<1x1x18x4xbf16>
    %3 = vector.shape_cast %2 : vector<1x1x18x4xbf16> to vector<18x4xbf16>
    %c0_7 = arith.constant 0 : index
    %c0_8 = arith.constant 0 : index
    %c0_9 = arith.constant 0 : index
    %c0_10 = arith.constant 0 : index
    %4 = vector.load %arg4[%c0_7, %c0_8, %c0_9, %c0_10] : memref<1x1x18x4xbf16, #tpu.memory_space<vmem>>, vector<1x1x18x4xbf16>
    %5 = vector.shape_cast %4 : vector<1x1x18x4xbf16> to vector<18x4xbf16>
    %c0_11 = arith.constant 0 : index
    %c0_12 = arith.constant 0 : index
    %6 = vector.load %arg5[%c0_11, %c0_12] : memref<36x4xbf16, #tpu.memory_space<vmem>>, vector<36x4xbf16>
    %cst = arith.constant 0.000000e+00 : f32
    %7 = vector.broadcast %cst : f32 to vector<16x4xf32>
    %8 = vector.extract_strided_slice %1 {offsets = [0, 0], sizes = [16, 4], strides = [1, 1]} : vector<18x4xbf16> to vector<16x4xbf16>
    %9 = vector.extract_strided_slice %6 {offsets = [0, 0], sizes = [4, 4], strides = [1, 1]} : vector<36x4xbf16> to vector<4x4xbf16>
    %cst_13 = arith.constant dense<0.000000e+00> : vector<16x4xf32>
    %10 = tpu.matmul %8, %9, %cst_13 {dimension_numbers = #tpu.dot_dimension_numbers<[1], [0], [0], [1], [0, 0, 1, 1], [], []>} : vector<16x4xbf16>, vector<4x4xbf16>, vector<16x4xf32> -> vector<16x4xf32>
    %11 = arith.addf %7, %10 : vector<16x4xf32>
    %12 = vector.extract_strided_slice %1 {offsets = [1, 0], sizes = [16, 4], strides = [1, 1]} : vector<18x4xbf16> to vector<16x4xbf16>
    %13 = vector.extract_strided_slice %6 {offsets = [4, 0], sizes = [4, 4], strides = [1, 1]} : vector<36x4xbf16> to vector<4x4xbf16>
    %cst_14 = arith.constant dense<0.000000e+00> : vector<16x4xf32>
    %14 = tpu.matmul %12, %13, %cst_14 {dimension_numbers = #tpu.dot_dimension_numbers<[1], [0], [0], [1], [0, 0, 1, 1], [], []>} : vector<16x4xbf16>, vector<4x4xbf16>, vector<16x4xf32> -> vector<16x4xf32>
    %15 = arith.addf %11, %14 : vector<16x4xf32>
    %16 = vector.extract_strided_slice %1 {offsets = [2, 0], sizes = [16, 4], strides = [1, 1]} : vector<18x4xbf16> to vector<16x4xbf16>
    %17 = vector.extract_strided_slice %6 {offsets = [8, 0], sizes = [4, 4], strides = [1, 1]} : vector<36x4xbf16> to vector<4x4xbf16>
    %cst_15 = arith.constant dense<0.000000e+00> : vector<16x4xf32>
    %18 = tpu.matmul %16, %17, %cst_15 {dimension_numbers = #tpu.dot_dimension_numbers<[1], [0], [0], [1], [0, 0, 1, 1], [], []>} : vector<16x4xbf16>, vector<4x4xbf16>, vector<16x4xf32> -> vector<16x4xf32>
    %19 = arith.addf %15, %18 : vector<16x4xf32>
    %20 = vector.extract_strided_slice %3 {offsets = [0, 0], sizes = [16, 4], strides = [1, 1]} : vector<18x4xbf16> to vector<16x4xbf16>
    %21 = vector.extract_strided_slice %6 {offsets = [12, 0], sizes = [4, 4], strides = [1, 1]} : vector<36x4xbf16> to vector<4x4xbf16>
    %cst_16 = arith.constant dense<0.000000e+00> : vector<16x4xf32>
    %22 = tpu.matmul %20, %21, %cst_16 {dimension_numbers = #tpu.dot_dimension_numbers<[1], [0], [0], [1], [0, 0, 1, 1], [], []>} : vector<16x4xbf16>, vector<4x4xbf16>, vector<16x4xf32> -> vector<16x4xf32>
    %23 = arith.addf %19, %22 : vector<16x4xf32>
    %24 = vector.extract_strided_slice %3 {offsets = [1, 0], sizes = [16, 4], strides = [1, 1]} : vector<18x4xbf16> to vector<16x4xbf16>
    %25 = vector.extract_strided_slice %6 {offsets = [16, 0], sizes = [4, 4], strides = [1, 1]} : vector<36x4xbf16> to vector<4x4xbf16>
    %cst_17 = arith.constant dense<0.000000e+00> : vector<16x4xf32>
    %26 = tpu.matmul %24, %25, %cst_17 {dimension_numbers = #tpu.dot_dimension_numbers<[1], [0], [0], [1], [0, 0, 1, 1], [], []>} : vector<16x4xbf16>, vector<4x4xbf16>, vector<16x4xf32> -> vector<16x4xf32>
    %27 = arith.addf %23, %26 : vector<16x4xf32>
    %28 = vector.extract_strided_slice %3 {offsets = [2, 0], sizes = [16, 4], strides = [1, 1]} : vector<18x4xbf16> to vector<16x4xbf16>
    %29 = vector.extract_strided_slice %6 {offsets = [20, 0], sizes = [4, 4], strides = [1, 1]} : vector<36x4xbf16> to vector<4x4xbf16>
    %cst_18 = arith.constant dense<0.000000e+00> : vector<16x4xf32>
    %30 = tpu.matmul %28, %29, %cst_18 {dimension_numbers = #tpu.dot_dimension_numbers<[1], [0], [0], [1], [0, 0, 1, 1], [], []>} : vector<16x4xbf16>, vector<4x4xbf16>, vector<16x4xf32> -> vector<16x4xf32>
    %31 = arith.addf %27, %30 : vector<16x4xf32>
    %32 = vector.extract_strided_slice %5 {offsets = [0, 0], sizes = [16, 4], strides = [1, 1]} : vector<18x4xbf16> to vector<16x4xbf16>
    %33 = vector.extract_strided_slice %6 {offsets = [24, 0], sizes = [4, 4], strides = [1, 1]} : vector<36x4xbf16> to vector<4x4xbf16>
    %cst_19 = arith.constant dense<0.000000e+00> : vector<16x4xf32>
    %34 = tpu.matmul %32, %33, %cst_19 {dimension_numbers = #tpu.dot_dimension_numbers<[1], [0], [0], [1], [0, 0, 1, 1], [], []>} : vector<16x4xbf16>, vector<4x4xbf16>, vector<16x4xf32> -> vector<16x4xf32>
    %35 = arith.addf %31, %34 : vector<16x4xf32>
    %36 = vector.extract_strided_slice %5 {offsets = [1, 0], sizes = [16, 4], strides = [1, 1]} : vector<18x4xbf16> to vector<16x4xbf16>
    %37 = vector.extract_strided_slice %6 {offsets = [28, 0], sizes = [4, 4], strides = [1, 1]} : vector<36x4xbf16> to vector<4x4xbf16>
    %cst_20 = arith.constant dense<0.000000e+00> : vector<16x4xf32>
    %38 = tpu.matmul %36, %37, %cst_20 {dimension_numbers = #tpu.dot_dimension_numbers<[1], [0], [0], [1], [0, 0, 1, 1], [], []>} : vector<16x4xbf16>, vector<4x4xbf16>, vector<16x4xf32> -> vector<16x4xf32>
    %39 = arith.addf %35, %38 : vector<16x4xf32>
    %40 = vector.extract_strided_slice %5 {offsets = [2, 0], sizes = [16, 4], strides = [1, 1]} : vector<18x4xbf16> to vector<16x4xbf16>
    %41 = vector.extract_strided_slice %6 {offsets = [32, 0], sizes = [4, 4], strides = [1, 1]} : vector<36x4xbf16> to vector<4x4xbf16>
    %cst_21 = arith.constant dense<0.000000e+00> : vector<16x4xf32>
    %42 = tpu.matmul %40, %41, %cst_21 {dimension_numbers = #tpu.dot_dimension_numbers<[1], [0], [0], [1], [0, 0, 1, 1], [], []>} : vector<16x4xbf16>, vector<4x4xbf16>, vector<16x4xf32> -> vector<16x4xf32>
    %43 = arith.addf %39, %42 : vector<16x4xf32>
    %c0_22 = arith.constant 0 : index
    %c0_23 = arith.constant 0 : index
    %44 = vector.load %arg6[%c0_22, %c0_23] : memref<1x4xf32, #tpu.memory_space<vmem>>, vector<1x4xf32>
    %45 = vector.broadcast %44 : vector<1x4xf32> to vector<16x4xf32>
    %46 = arith.addf %43, %45 : vector<16x4xf32>
    %c0_24 = arith.constant 0 : index
    %c0_25 = arith.constant 0 : index
    %c0_26 = arith.constant 0 : index
    %c0_27 = arith.constant 0 : index
    %47 = vector.load %arg7[%c0_24, %c0_25, %c0_26, %c0_27] : memref<1x1x16x4xf32, #tpu.memory_space<vmem>>, vector<1x1x16x4xf32>
    %48 = vector.shape_cast %47 : vector<1x1x16x4xf32> to vector<16x4xf32>
    %49 = vector.shape_cast %46 : vector<16x4xf32> to vector<1x1x16x4xf32>
    tpu.vector_store %arg7[%c0_24, %c0_25, %c0_26, %c0_27], %49 {strides = array<i32>} : memref<1x1x16x4xf32, #tpu.memory_space<vmem>>, vector<1x1x16x4xf32>,
    %cst_28 = arith.constant dense<0.000000e+00> : vector<4xf32>
    %50 = vector.multi_reduction <add>, %46, %cst_28 [0] : vector<16x4xf32> to vector<4xf32>
    %51 = vector.shape_cast %50 : vector<4xf32> to vector<1x4xf32>
    %c0_29 = arith.constant 0 : index
    %c0_30 = arith.constant 0 : index
    %c0_31 = arith.constant 0 : index
    %c0_32 = arith.constant 0 : index
    %52 = vector.load %arg8[%c0_29, %c0_30, %c0_31, %c0_32] : memref<1x1x2x4xf32, #tpu.memory_space<vmem>>, vector<1x1x1x4xf32>
    %53 = vector.shape_cast %52 : vector<1x1x1x4xf32> to vector<1x4xf32>
    %54 = vector.shape_cast %51 : vector<1x4xf32> to vector<1x1x1x4xf32>
    tpu.vector_store %arg8[%c0_29, %c0_30, %c0_31, %c0_32], %54 {strides = array<i32>} : memref<1x1x2x4xf32, #tpu.memory_space<vmem>>, vector<1x1x1x4xf32>,
    %55 = arith.mulf %46, %46 : vector<16x4xf32>
    %cst_33 = arith.constant dense<0.000000e+00> : vector<4xf32>
    %56 = vector.multi_reduction <add>, %55, %cst_33 [0] : vector<16x4xf32> to vector<4xf32>
    %57 = vector.shape_cast %56 : vector<4xf32> to vector<1x4xf32>
    %c0_34 = arith.constant 0 : index
    %c0_35 = arith.constant 0 : index
    %c1 = arith.constant 1 : index
    %c0_36 = arith.constant 0 : index
    %58 = vector.load %arg8[%c0_34, %c0_35, %c1, %c0_36] : memref<1x1x2x4xf32, #tpu.memory_space<vmem>>, vector<1x1x1x4xf32>
    %59 = vector.shape_cast %58 : vector<1x1x1x4xf32> to vector<1x4xf32>
    %60 = vector.shape_cast %57 : vector<1x4xf32> to vector<1x1x1x4xf32>
    tpu.vector_store %arg8[%c0_34, %c0_35, %c1, %c0_36], %60 {strides = array<i32>} : memref<1x1x2x4xf32, #tpu.memory_space<vmem>>, vector<1x1x1x4xf32>,
    return
  }
  func.func @transform_0(%arg0: i32, %arg1: i32) -> (i32, i32, i32, i32) {
    %c0_i32 = arith.constant 0 : i32
    %0 = arith.addi %arg1, %c0_i32 : i32
    %c0_i32_0 = arith.constant 0 : i32
    %c0_i32_1 = arith.constant 0 : i32
    %c0_i32_2 = arith.constant 0 : i32
    return %arg0, %0, %c0_i32_0, %c0_i32_1 : i32, i32, i32, i32
  }
  func.func @transform_1(%arg0: i32, %arg1: i32) -> (i32, i32, i32, i32) {
    %c1_i32 = arith.constant 1 : i32
    %0 = arith.addi %arg1, %c1_i32 : i32
    %c0_i32 = arith.constant 0 : i32
    %c0_i32_0 = arith.constant 0 : i32
    %c0_i32_1 = arith.constant 0 : i32
    return %arg0, %0, %c0_i32, %c0_i32_0 : i32, i32, i32, i32
  }
  func.func @transform_2(%arg0: i32, %arg1: i32) -> (i32, i32, i32, i32) {
    %c2_i32 = arith.constant 2 : i32
    %0 = arith.addi %arg1, %c2_i32 : i32
    %c0_i32 = arith.constant 0 : i32
    %c0_i32_0 = arith.constant 0 : i32
    %c0_i32_1 = arith.constant 0 : i32
    return %arg0, %0, %c0_i32, %c0_i32_0 : i32, i32, i32, i32
  }
  func.func @transform_3(%arg0: i32, %arg1: i32) -> (i32, i32) {
    %c0_i32 = arith.constant 0 : i32
    %c0_i32_0 = arith.constant 0 : i32
    %c0_i32_1 = arith.constant 0 : i32
    return %c0_i32, %c0_i32_0 : i32, i32
  }
  func.func @transform_4(%arg0: i32, %arg1: i32) -> (i32, i32) {
    %c0_i32 = arith.constant 0 : i32
    %c0_i32_0 = arith.constant 0 : i32
    %c0_i32_1 = arith.constant 0 : i32
    return %c0_i32, %c0_i32_0 : i32, i32
  }
  func.func @transform_5(%arg0: i32, %arg1: i32) -> (i32, i32, i32, i32) {
    %c0_i32 = arith.constant 0 : i32
    %c0_i32_0 = arith.constant 0 : i32
    %c0_i32_1 = arith.constant 0 : i32
    return %arg0, %arg1, %c0_i32, %c0_i32_0 : i32, i32, i32, i32
  }
  func.func @transform_6(%arg0: i32, %arg1: i32) -> (i32, i32, i32, i32) {
    %c0_i32 = arith.constant 0 : i32
    %c0_i32_0 = arith.constant 0 : i32
    %c0_i32_1 = arith.constant 0 : i32
    return %arg0, %arg1, %c0_i32, %c0_i32_0 : i32, i32, i32, i32
  }
}

module attributes {stable_mosaic.version = 11 : i64} {
  func.func @_bn_relu2d_kernel(%arg0: i32, %arg1: memref<512x4xf32, #tpu.memory_space<vmem>>, %arg2: memref<1x4xf32, #tpu.memory_space<vmem>>, %arg3: memref<1x4xf32, #tpu.memory_space<vmem>>, %arg4: memref<512x4xf32, #tpu.memory_space<vmem>>) attributes {dimension_semantics = [#tpu.dimension_semantics<parallel>], iteration_bounds = array<i64: 1>, scalar_prefetch = 0 : i64, scratch_operands = 0 : i64, tpu.core_type = #tpu.core_type<tc>, window_params = [{transform_indices = @transform_0, window_bounds = array<i64: 512, 4>}, {pipeline_mode = #tpu.pipeline_mode<synchronous>, transform_indices = @transform_1, window_bounds = array<i64: 1, 4>}, {pipeline_mode = #tpu.pipeline_mode<synchronous>, transform_indices = @transform_2, window_bounds = array<i64: 1, 4>}, {transform_indices = @transform_3, window_bounds = array<i64: 512, 4>}]} {
    %c0 = arith.constant 0 : index
    %c0_0 = arith.constant 0 : index
    %0 = vector.load %arg1[%c0, %c0_0] : memref<512x4xf32, #tpu.memory_space<vmem>>, vector<512x4xf32>
    %c0_1 = arith.constant 0 : index
    %c0_2 = arith.constant 0 : index
    %1 = vector.load %arg2[%c0_1, %c0_2] : memref<1x4xf32, #tpu.memory_space<vmem>>, vector<1x4xf32>
    %2 = vector.broadcast %1 : vector<1x4xf32> to vector<512x4xf32>
    %3 = arith.mulf %0, %2 : vector<512x4xf32>
    %c0_3 = arith.constant 0 : index
    %c0_4 = arith.constant 0 : index
    %4 = vector.load %arg3[%c0_3, %c0_4] : memref<1x4xf32, #tpu.memory_space<vmem>>, vector<1x4xf32>
    %5 = vector.broadcast %4 : vector<1x4xf32> to vector<512x4xf32>
    %6 = arith.addf %3, %5 : vector<512x4xf32>
    %cst = arith.constant 0.000000e+00 : f32
    %7 = vector.broadcast %cst : f32 to vector<512x4xf32>
    %8 = arith.maximumf %6, %7 : vector<512x4xf32>
    %c0_5 = arith.constant 0 : index
    %c0_6 = arith.constant 0 : index
    %9 = vector.load %arg4[%c0_5, %c0_6] : memref<512x4xf32, #tpu.memory_space<vmem>>, vector<512x4xf32>
    tpu.vector_store %arg4[%c0_5, %c0_6], %8 {strides = array<i32>} : memref<512x4xf32, #tpu.memory_space<vmem>>, vector<512x4xf32>,
    return
  }
  func.func @transform_0(%arg0: i32) -> (i32, i32) {
    %c0_i32 = arith.constant 0 : i32
    %c0_i32_0 = arith.constant 0 : i32
    return %arg0, %c0_i32 : i32, i32
  }
  func.func @transform_1(%arg0: i32) -> (i32, i32) {
    %c0_i32 = arith.constant 0 : i32
    %c0_i32_0 = arith.constant 0 : i32
    %c0_i32_1 = arith.constant 0 : i32
    return %c0_i32, %c0_i32_0 : i32, i32
  }
  func.func @transform_2(%arg0: i32) -> (i32, i32) {
    %c0_i32 = arith.constant 0 : i32
    %c0_i32_0 = arith.constant 0 : i32
    %c0_i32_1 = arith.constant 0 : i32
    return %c0_i32, %c0_i32_0 : i32, i32
  }
  func.func @transform_3(%arg0: i32) -> (i32, i32) {
    %c0_i32 = arith.constant 0 : i32
    %c0_i32_0 = arith.constant 0 : i32
    return %arg0, %c0_i32 : i32, i32
  }
}

</mosaic_0001>

<bundles_post_ra>
// kernel: up_forward.5
= control target key start
LH: loop header
LB: loop body
LE: loop exit
PB: predicated region body
PF: predicated region fallthrough
CT: control target
= control target key end

     0   :  { %vm104_vm0 = vcmask 1043456   ;;  %vm79_vm1 = vcmask 64512   ;;  %vm269_vm2 = vcmask 125952   ;;  %s500_s1 = inlined_call_operand.vmem [shape: bf16[8,16], index: 1, kind: input, shape index: {}]   ;;  %s501_s0 = inlined_call_operand.vmem [shape: bf16[128,8], index: 0, kind: input, shape index: {}]   ;;  %s502_s2 = inlined_call_operand.vmem [shape: f32[1,16], index: 2, kind: input, shape index: {}]   ;;  %s503_s3 = inlined_call_operand.vmem [shape: bf16[128,16], index: 3, kind: output, shape index: {}]  }
   0x1   :  { %v31_v0 = vld [vmem:[%s500_s1] sm:$0xf]  ;;  %v372_v4 = vld [vmem:[%s501_s0 + $0x8] sm:$0xff]   ;;  %v374_v6 = vld [vmem:[%s501_s0 + $0x10] sm:$0xff]  }
   0x2   :  { %368 = vmatprep.subr.msk.bf16.mxu0 %vm104_vm0, %v31_v0  ;;  %369 = vmatprep.subr.msk.bf16.mxu1 %vm104_vm0, %v31_v0  ;;  %v106_v1 = vsel %vm104_vm0, %v31_v0, 0  ;;  %v370_v2 = vld [vmem:[%s501_s0] sm:$0xff]   ;;  %v373_v5 = vld [vmem:[%s501_s0 + $0x28] sm:$0xff]   ;;  %v375_v7 = vld [vmem:[%s501_s0 + $0x30] sm:$0xff]  }
   0x3   :  { %349 = vmatpush3.bf16.msra.mxu0 %v106_v1  ;;  %367 = vmatpush3.bf16.msra.mxu1 %v106_v1  ;;  %v371_v3 = vld [vmem:[%s501_s0 + $0x20] sm:$0xff]   ;;  %v376_v8 = vld [vmem:[%s501_s0 + $0x18] sm:$0xff]  }
   0x4   :  { %350 = vmatprep.mubr.msk.bf16.mxu0 %vm79_vm1, %v370_v2  ;;  %358 = vmatprep.mubr.msk.bf16.mxu1 %vm79_vm1, %v371_v3  ;;  %v377_v9 = vld [vmem:[%s501_s0 + $0x38] sm:$0xff]   ;;  %v290_v10 = vld [vmem:[%s502_s2] ss:$0 sm:$0xff] }
   0x6   :  { %351 = vmatmul.mubr.msk.bf16.vlgmr.msra.gmra.mrb[0].mxu0 %vm79_vm1, %v372_v4  ;;  %359 = vmatmul.mubr.msk.bf16.vlgmr.msra.gmra.mrb[0].mxu1 %vm79_vm1, %v373_v5 }
   0x7   :  { %354 = vmatprep.mubr.msk.bf16.mxu0 %vm79_vm1, %v374_v6  ;;  %362 = vmatprep.mubr.msk.bf16.mxu1 %vm79_vm1, %v375_v7 }
   0xe   :  { %355 = vmatmul.mubr.msk.bf16.gmra.mrb[4].mxu0 %vm79_vm1, %v376_v8  ;;  %363 = vmatmul.mubr.msk.bf16.gmra.mrb[4].mxu1 %vm79_vm1, %v377_v9 }
  0xd9   :  { %v352_v11 = vpop.f32.mrb[0].mxu0  ;;  %v360_v13 = vpop.f32.mrb[0].mxu1 }
  0xda   :  { %v151_v12 = vadd.f32 %v352_v11, %v290_v10  ;;  %v142_v14 = vpop.f32.mrb[1].mxu0  ;;  %v183_v15 = vadd.f32 %v360_v13, %v290_v10  ;;  %v174_v17 = vpop.f32.mrb[1].mxu1 }
  0xdb   :  { %v143_v16 = vadd.f32 %v290_v10, %v142_v14  ;;  %v353_v18 = vpop.f32.mrb[2].mxu0  ;;  %v175_v20 = vadd.f32 %v290_v10, %v174_v17  ;;  %v361_v22 = vpop.f32.mrb[2].mxu1 }
  0xdc   :  { %v325_v19 = vpack.c.bf16 %v151_v12, %v151_v12  ;;  %v154_v21 = vadd.f32 %v353_v18, %v290_v10  ;;  %v145_v23 = vpop.f32.mrb[3].mxu0  ;;  %v333_v24 = vpack.c.bf16 %v183_v15, %v183_v15  ;;  %v186_v26 = vadd.f32 %v361_v22, %v290_v10  ;;  %v177_v28 = vpop.f32.mrb[3].mxu1 }
  0xdd   :  { %v323_v25 = vpack.c.bf16 %v143_v16, %v143_v16  ;;  %v146_v27 = vadd.f32 %v290_v10, %v145_v23  ;;  %v331_v29 = vpack.c.bf16 %v175_v20, %v175_v20  ;;  %v178_v31 = vadd.f32 %v290_v10, %v177_v28 }
  0xde   :  { %272 = vst.msk [vmem:[%s503_s3 + $0x8] sm:$0xf] %vm269_vm2, %v325_v19  ;;  %v326_v30 = vpack.c.bf16 %v154_v21, %v154_v21  ;;  %280 = vst.msk [vmem:[%s503_s3 + $0x28] sm:$0xf] %vm269_vm2, %v333_v24  ;;  %v334_v32 = vpack.c.bf16 %v186_v26, %v186_v26 }
  0xdf   :  { %270 = vst.msk [vmem:[%s503_s3] sm:$0xf] %vm269_vm2, %v323_v25  ;;  %v324_v33 = vpack.c.bf16 %v146_v27, %v146_v27  ;;  %278 = vst.msk [vmem:[%s503_s3 + $0x20] sm:$0xf] %vm269_vm2, %v331_v29  ;;  %v332_v34 = vpack.c.bf16 %v178_v31, %v178_v31 }
  0xe0   :  { %273 = vst.msk [vmem:[%s503_s3 + $0xc] sm:$0xf] %vm269_vm2, %v326_v30  ;;  %281 = vst.msk [vmem:[%s503_s3 + $0x2c] sm:$0xf] %vm269_vm2, %v334_v32 }
  0xe1   :  { %271 = vst.msk [vmem:[%s503_s3 + $0x4] sm:$0xf] %vm269_vm2, %v324_v33  ;;  %v356_v35 = vpop.f32.mrb[4].mxu0  ;;  %279 = vst.msk [vmem:[%s503_s3 + $0x24] sm:$0xf] %vm269_vm2, %v332_v34  ;;  %v364_v37 = vpop.f32.mrb[4].mxu1 }
  0xe2   :  { %v167_v36 = vadd.f32 %v356_v35, %v290_v10  ;;  %v158_v38 = vpop.f32.mrb[5].mxu0  ;;  %v199_v39 = vadd.f32 %v364_v37, %v290_v10  ;;  %v190_v41 = vpop.f32.mrb[5].mxu1 }
  0xe3   :  { %v159_v40 = vadd.f32 %v290_v10, %v158_v38  ;;  %v357_v42 = vpop.f32.mrb[6].mxu0  ;;  %v191_v44 = vadd.f32 %v290_v10, %v190_v41  ;;  %v365_v46 = vpop.f32.mrb[6].mxu1 }
  0xe4   :  { %v329_v43 = vpack.c.bf16 %v167_v36, %v167_v36  ;;  %v170_v45 = vadd.f32 %v357_v42, %v290_v10  ;;  %v161_v47 = vpop.f32.mrb[7].mxu0  ;;  %v337_v48 = vpack.c.bf16 %v199_v39, %v199_v39  ;;  %v202_v50 = vadd.f32 %v365_v46, %v290_v10  ;;  %v193_v52 = vpop.f32.mrb[7].mxu1 }
  0xe5   :  { %v327_v49 = vpack.c.bf16 %v159_v40, %v159_v40  ;;  %v162_v51 = vadd.f32 %v290_v10, %v161_v47  ;;  %v335_v53 = vpack.c.bf16 %v191_v44, %v191_v44  ;;  %v194_v55 = vadd.f32 %v290_v10, %v193_v52 }
  0xe6   :  { %276 = vst.msk [vmem:[%s503_s3 + $0x18] sm:$0xf] %vm269_vm2, %v329_v43  ;;  %v330_v54 = vpack.c.bf16 %v170_v45, %v170_v45  ;;  %284 = vst.msk [vmem:[%s503_s3 + $0x38] sm:$0xf] %vm269_vm2, %v337_v48  ;;  %v338_v56 = vpack.c.bf16 %v202_v50, %v202_v50 }
  0xe7   :  { %274 = vst.msk [vmem:[%s503_s3 + $0x10] sm:$0xf] %vm269_vm2, %v327_v49  ;;  %v328_v57 = vpack.c.bf16 %v162_v51, %v162_v51  ;;  %282 = vst.msk [vmem:[%s503_s3 + $0x30] sm:$0xf] %vm269_vm2, %v335_v53  ;;  %v336_v58 = vpack.c.bf16 %v194_v55, %v194_v55 }
  0xe8   :  { %277 = vst.msk [vmem:[%s503_s3 + $0x1c] sm:$0xf] %vm269_vm2, %v330_v54  ;;  %285 = vst.msk [vmem:[%s503_s3 + $0x3c] sm:$0xf] %vm269_vm2, %v338_v56 }
  0xe9   :  { %275 = vst.msk [vmem:[%s503_s3 + $0x14] sm:$0xf] %vm269_vm2, %v328_v57  ;;  %283 = vst.msk [vmem:[%s503_s3 + $0x34] sm:$0xf] %vm269_vm2, %v336_v58 }

// kernel: up_forward.7
= control target key start
LH: loop header
LB: loop body
LE: loop exit
PB: predicated region body
PF: predicated region fallthrough
CT: control target
= control target key end

     0   :  { %s568_s12 = smov 0   ;;  %s570_s13 = smov 0   ;;  %s669_s0 = inlined_call_operand.vmem [shape: f32[2,16,16,4], index: 0, kind: input, shape index: {}]   ;;  %s670_s1 = inlined_call_operand.vmem [shape: f32[1,4], index: 1, kind: input, shape index: {}]   ;;  %s671_s2 = inlined_call_operand.vmem [shape: f32[1,4], index: 2, kind: input, shape index: {}]   ;;  %s672_s3 = inlined_call_operand.vmem [shape: bf16[2,18,18,4], index: 3, kind: output, shape index: {}]  }
   0x1   :  { %s572_s14 = smov 0   ;;  %s574_s15 = smov 0  }
   0x2   :  { %s576_s16 = smov 0  }
   0x3 LB: > { %s22_s17 = sadd.s32 1, %s537_s14  ;;  %s25_s18 = sadd.s32 1, %s541_s15  ;;  %s545_s16 = sphi %s576_s16, %s13_s16   ;;  %s541_s15 = sphi %s574_s15, %s679_s15   ;;  %s537_s14 = sphi %s572_s14, %s678_s14   ;;  %s533_s13 = sphi %s570_s13, %s677_s13   ;;  %s529_s12 = sphi %s568_s12, %s676_s12  }
   0x4   : > { %p23_p0 = scmp.ge.s32.totalorder %s22_s17, 18  ;;  %p439_p1 = scmp.ge.s32.totalorder %s545_s16, 1 }
   0x5   : > { %p177_p2 = scmp.lt.s32.totalorder %s545_s16, 37 }
   0x6   : > { %s681_s17 = smov (%p23_p0, %s22_s17), 0  ;;  %s683_s18 = smov (!%p23_p0, %s25_s18), %s541_s15 }
   0x7   : > { %p178_p3 = pnand %p439_p1, %p177_p2  ;;  %p27_p4 = scmp.ge.s32.totalorder %s683_s18, 2 }
   0x8   : > { %s440_s19 = sadd.s32 (!%p178_p3), 4294967295, %s529_s12  ;;  %p219_p5 = scmp.lt.s32.totalorder (!%p178_p3), %s533_s13, 1 }
   0x9   : > { %s685_s18 = smov (%p27_p4, %s683_s18), 0  ;;  %181 = sbr.rel (%p178_p3) target bundleno = 59 (0x3b), region = 32 }
   0xa   : > { %p215_p6 = scmp.gt.s32.totalorder (!%p178_p3), %s440_s19, 0  ;;  %p441_p7 = scmp.lt.s32.totalorder (!%p178_p3), %s440_s19, 15 }
   0xb   : > { %p235_p8 = scmp.lt.s32.totalorder (!%p178_p3), %s529_s12, 17  ;;  %p243_p10 = scmp.gt.s32.totalorder (!%p178_p3), %s529_s12, 0 }
   0xd   : > { %p604_p11 = pnand (!%p178_p3), %p243_p10, %p235_p8 }
  0x10   : > { %s687_s13 = smov (!%p219_p5, %s533_s13), 1  ;;  %s689_s19 = smov (!%p215_p6, %s440_s19), 0 }
  0x11   : > { %s447_s20 = sshll.u32 %s687_s13, 5  ;;  %s691_s19 = smov (!%p441_p7, %s689_s19), 15  ;;  %vm272_vm0 = vcmask (!%p604_p11), 24576   ;;  %vm273_vm1 = vsmask.f32 (!%p604_p11), 256  ;;  %vm305_vm3 = vcmask (!%p604_p11), 27648  }
  0x12   : > { %s236_s21 = scalar_select %p235_p8, %s529_s12, 17 }
  0x13   : > { %p221_p9 = scmp.lt.s32.totalorder %s691_s19, 15  ;;  %s465_s22 = smul.u32 54, %s687_s13  ;;  %vm621_vm2 = vmand (!%p604_p11), %vm272_vm0, %vm273_vm1  ;;  %v450_v5 = vld [vmem:[%s670_s1] ss:$0 sm:$0xff] (!%p604_p11)  ;;  %vm306_vm4 = vsmask.f32 (!%p604_p11), 7938 }
  0x14   : > { %s464_s23 = smul.u32 3, %s236_s21  ;;  %v451_v6 = vld [vmem:[%s671_s2] ss:$0 sm:$0xff] (!%p604_p11)  ;;  %vm283_vm5 = vsmask.f32 (!%p604_p11), 4368  ;;  %vm307_vm6 = vmand (!%p604_p11), %vm305_vm3, %vm306_vm4 }
  0x15   : > { %s693_s19 = smov (!%p221_p9, %s691_s19), 15  ;;  %248 = sbr.rel (%p604_p11) target bundleno = 52 (0x34), region = 36 }
  0x16   : > { %s239_s24 = sadd.s32 %s465_s22, %s464_s23  ;;  %s446_s26 = sshll.u32 %s693_s19, 1  ;;  %vm284_vm7 = vmor (!%p604_p11), %vm273_vm1, %vm283_vm5 }
  0x17   : > { %s449_s27 = sshll.u32 %s239_s24, 2  ;;  %s225_s28 = sadd.s32 %s447_s20, %s446_s26  ;;  %vm316_vm8 = vmand (!%p604_p11), %vm272_vm0, %vm306_vm4 }
  0x18   : > { %s611_s4 = scalar_lea.vmem %s672_s3, %s449_s27  ;;  %s448_s5 = sshll.u32 %s225_s28, 3 }
  0x19   : > { %s227_s8 = scalar_lea.vmem %s669_s0, %s448_s5  ;;  %v275_v0 = vld [vmem:[%s611_s4] sm:$0x1] (!%p604_p11)  ;;  %v313_v21 = vld [vmem:[%s611_s4 + $0x8] sm:$0x1] (!%p604_p11) }
  0x1a   : > { %v249_v2 = vld [vmem:[%s227_s8] sm:$0xff] (!%p604_p11)  ;;  %v250_v3 = vld [vmem:[%s227_s8 + $0x8] sm:$0xff] (!%p604_p11)  ;;  %v276_v4 = vsel (!%p604_p11), %vm621_vm2, 0, %v275_v0 }
  0x1b   : > { %277 = vst [vmem:[%s611_s4] sm:$0x1] (!%p604_p11), %v276_v4  ;;  %v258_v7 = vmul.f32 (!%p604_p11), %v450_v5, %v249_v2  ;;  %v259_v8 = vmul.f32 (!%p604_p11), %v450_v5, %v250_v3 }
  0x1d   : > { %v267_v9 = vadd.f32 %v451_v6, %v258_v7  ;;  %v268_v10 = vadd.f32 %v451_v6, %v259_v8 }
  0x1f   : > { %v270_v11 = vmax.f32 %v268_v10, 0.0  ;;  %v269_v12 = vmax.f32 %v267_v9, 0.0 }
  0x21   : > { %v463_v13 = vpack.c.bf16 %v270_v11, %v270_v11  ;;  %v462_v14 = vpack.c.bf16 %v269_v12, %v269_v12 }
  0x22   : > { %v308_v22 = vld [vmem:[%s611_s4] sm:$0xf] }
  0x23   : > { %v294_v15 = vshrl.u32 %v463_v13, 16  ;;  %v286_v16 = vshrl.u32 %v462_v14, 16  ;;  %v289_v17 = vshll.u32 %v462_v14, 16  ;;  %v297_v18 = vshll.u32 %v463_v13, 16 }
  0x25   : > { %v296_v19 = vrot.slane %v294_v15, 7  ;;  %v288_v20 = vrot.slane %v286_v16, 7 }
  0x27   : > { %v301_v23 = vrot.slane %v296_v19, 4  ;;  %v291_v24 = vor.u32 %v289_v17, %v288_v20  ;;  %v292_v25 = vrot.slane %v288_v20, 4  ;;  %v299_v26 = vor.u32 %v297_v18, %v296_v19 }
  0x29   : > { %v314_v27 = vsel %vm621_vm2, %v301_v23, %v313_v21  ;;  %v309_v28 = vsel %vm307_vm6, %v291_v24, %v308_v22  ;;  %v300_v29 = vsel %vm284_vm7, %v292_v25, %v299_v26 }
  0x2a   : > { %315 = vst [vmem:[%s611_s4 + $0x8] sm:$0x1] %v314_v27  ;;  %310 = vst [vmem:[%s611_s4] sm:$0xf] %v309_v28 }
  0x2b   : > { %312 = vst.msk [vmem:[%s611_s4 + $0x4] sm:$0xf] %vm305_vm3, %v300_v29 }
  0x31   : > { %v317_v30 = vld [vmem:[%s611_s4 + $0x8] sm:$0x1] }
  0x32   : > { %v318_v31 = vsel %vm316_vm8, 0, %v317_v30 }
  0x33   : > { %319 = vst [vmem:[%s611_s4 + $0x8] sm:$0x1] %v318_v31 }
  0x34 PF: > { %322 = sbr.rel (!%p604_p11) target bundleno = 59 (0x3b), region = 40  ;;  %vm323_vm9 = vcmask (%p604_p11), 27648   ;;  %vm326_vm10 = vcmask (%p604_p11), 24576   ;;  %v547_v32 = vmov (%p604_p11), 0  }
  0x35   : > { %324 = vst.msk [vmem:[%s611_s4] sm:$0xf] (%p604_p11), %vm323_vm9, %v547_v32  ;;  %325 = vst.msk [vmem:[%s611_s4 + $0x4] sm:$0xf] (%p604_p11), %vm323_vm9, %v547_v32 }
  0x36   : > { %327 = vst.msk [vmem:[%s611_s4 + $0x8] sm:$0x1] (%p604_p11), %vm326_vm10, %v547_v32 }
  0x3b PF: > { %s13_s16 = sadd.s32 1, %s545_s16   ;;  %s676_s12 = smov %s537_s14 }
  0x3c   : > { %p10_p12 = scmp.ge.s32.totalorder %s13_s16, 38   ;;  %s677_s13 = smov %s541_s15 }
  0x3d   : > { %s678_s14 = smov %s681_s17  ;;  %s679_s15 = smov %s685_s18 }
  0x3e   :  { %12 = sbr.rel (!%p10_p12) target bundleno = 3 (0x3), region = 70 }

// kernel: up_forward.6
= control target key start
LH: loop header
LB: loop body
LE: loop exit
PB: predicated region body
PF: predicated region fallthrough
CT: control target
= control target key end

     0   :  { %s1368_s21 = smov 0   ;;  %s1370_s22 = smov 0   ;;  %s1535_s0 = inlined_call_operand.vmem [shape: bf16[2,18,18,8], index: 0, kind: input, shape index: {}, may-alias: {0,1,2}]   ;;  %s1536_s1 = inlined_call_operand.vmem [shape: bf16[2,18,18,8], index: 1, kind: input, shape index: {}, may-alias: {0,1,2}]   ;;  %s1537_s2 = inlined_call_operand.vmem [shape: bf16[2,18,18,8], index: 2, kind: input, shape index: {}, may-alias: {0,1,2}]   ;;  %s1538_s3 = inlined_call_operand.vmem [shape: bf16[72,4], index: 3, kind: input, shape index: {}]   ;;  %s1539_s4 = inlined_call_operand.vmem [shape: f32[1,4], index: 4, kind: input, shape index: {}]   ;;  %s1540_s5 = inlined_call_operand.vmem [shape: f32[2,16,16,4], index: 5, kind: output, shape index: {0}]   ;;  %s1541_s6 = inlined_call_operand.vmem [shape: f32[2,16,2,4], index: 6, kind: output, shape index: {1}]  }
   0x1   :  { %s1372_s23 = smov 0   ;;  %s1374_s24 = smov 0  }
   0x2   :  { %s1376_s25 = smov 0  }
   0x3 LB: > { %s26_s26 = sadd.s32 1, %s1321_s23  ;;  %s29_s27 = sadd.s32 1, %s1325_s24  ;;  %s1329_s25 = sphi %s1376_s25, %s17_s25   ;;  %s1325_s24 = sphi %s1374_s24, %s1545_s24   ;;  %s1321_s23 = sphi %s1372_s23, %s1544_s23   ;;  %s1317_s22 = sphi %s1370_s22, %s1543_s22   ;;  %s1313_s21 = sphi %s1368_s21, %s1542_s21  }
   0x4   : > { %p27_p0 = scmp.ge.s32.totalorder %s26_s26, 16  ;;  %p1140_p1 = scmp.ge.s32.totalorder %s1329_s25, 1 }
   0x5   : > { %p277_p2 = scmp.lt.s32.totalorder %s1329_s25, 33 }
   0x6   : > { %s1547_s26 = smov (%p27_p0, %s26_s26), 0  ;;  %s1549_s27 = smov (!%p27_p0, %s29_s27), %s1325_s24 }
   0x7   : > { %p278_p3 = pnand %p1140_p1, %p277_p2  ;;  %p31_p4 = scmp.ge.s32.totalorder %s1549_s27, 2 }
   0x8   : > { %v402_v0 = vld [vmem:[%s1538_s3 + $0x4] sm:$0xf] (!%p278_p3)  ;;  %vm435_vm0 = vcmask (!%p278_p3), 1043456   ;;  %v401_v1 = vld [vmem:[%s1538_s3] sm:$0xf] (!%p278_p3)  ;;  %v1331_v2 = vmov (!%p278_p3), 0.0  }
   0x9   : > { %s1551_s27 = smov (%p31_p4, %s1549_s27), 0  ;;  %281 = sbr.rel (%p278_p3) target bundleno = 300 (0x12c), region = 40 }
   0xa   : > { %1185 = vmatprep.subr.bf16.mxu0 (!%p278_p3), %v1331_v2  ;;  %v437_v3 = vsel (!%p278_p3), %vm435_vm0, %v402_v0, 0  ;;  %1191 = vmatprep.subr.bf16.mxu1 (!%p278_p3), %v1331_v2  ;;  %v483_v4 = vsel (!%p278_p3), %vm435_vm0, %v401_v1, 0  ;;  %p343_p5 = scmp.lt.s32.totalorder (!%p278_p3), %s1317_s22, 1  ;;  %p345_p6 = scmp.lt.s32.totalorder (!%p278_p3), %s1313_s21, 17  ;;  %vm1332_vm1 = vmmov (!%p278_p3), 0   ;;  %vm431_vm2 = vcmask (!%p278_p3), 64512  }
   0xb   : > { %1186 = vmatpush3.bf16.msra.mxu0 (!%p278_p3), %v437_v3  ;;  %1192 = vmatpush3.bf16.msra.mxu1 (!%p278_p3), %v483_v4  ;;  %s352_s10 = sadd.s32 (!%p278_p3), 1, %s1313_s21  ;;  %s363_s12 = sadd.s32 (!%p278_p3), 2, %s1313_s21  ;;  %v404_v5 = vld [vmem:[%s1538_s3 + $0xc] sm:$0xf] (!%p278_p3)  ;;  %v403_v14 = vld [vmem:[%s1538_s3 + $0x8] sm:$0xf] (!%p278_p3) }
   0xc   : > { %1187 = vmatprep.mubr.msk.bf16.mxu0 (!%p278_p3), %vm1332_vm1, %v1331_v2  ;;  %1193 = vmatprep.mubr.msk.bf16.mxu1 (!%p278_p3), %vm1332_vm1, %v1331_v2  ;;  %p355_p7 = scmp.lt.s32.totalorder (!%p278_p3), %s352_s10, 17  ;;  %p366_p8 = scmp.lt.s32.totalorder (!%p278_p3), %s363_s12, 17  ;;  %v588_v8 = vsel (!%p278_p3), %vm435_vm0, %v404_v5, 0  ;;  %vm418_vm3 = vsmask.f32 (!%p278_p3), 7424  ;;  %v534_v17 = vsel (!%p278_p3), %vm435_vm0, %v403_v14, 0 }
   0xd   : > { %1197 = vmatprep.subr.bf16.mxu0 (!%p278_p3), %v1331_v2  ;;  %1203 = vmatprep.subr.bf16.mxu1 (!%p278_p3), %v1331_v2  ;;  %v406_v15 = vld [vmem:[%s1538_s3 + $0x14] sm:$0xf] (!%p278_p3)  ;;  %vm526_vm4 = vcmask (!%p278_p3), 1046528   ;;  %v405_v26 = vld [vmem:[%s1538_s3 + $0x10] sm:$0xf] (!%p278_p3)  ;;  %p376_p9 = scmp.lt.s32.totalorder (!%p278_p3), %s1313_s21, 15 }
   0xe   : > { %v703_v20 = vsel (!%p278_p3), %vm435_vm0, %v406_v15, 0  ;;  %v408_v35 = vld [vmem:[%s1538_s3 + $0x1c] sm:$0xf] (!%p278_p3)  ;;  %v651_v36 = vsel (!%p278_p3), %vm435_vm0, %v405_v26, 0  ;;  %v407_v44 = vld [vmem:[%s1538_s3 + $0x18] sm:$0xf] (!%p278_p3) }
   0xf   : > { %v820_v41 = vsel (!%p278_p3), %vm435_vm0, %v408_v35, 0  ;;  %v757_v48 = vsel (!%p278_p3), %vm435_vm0, %v407_v44, 0  ;;  %v409_v50 = vld [vmem:[%s1538_s3 + $0x20] sm:$0xf] (!%p278_p3)  ;;  %vm926_vm5 = vcmask (!%p278_p3), 31744   ;;  %vm938_vm6 = vcmask (!%p278_p3), 24576  }
  0x10   : > { %s1553_s22 = smov (!%p343_p5, %s1317_s22), 1  ;;  %s1555_s10 = smov (!%p355_p7, %s352_s10), 17  ;;  %v872_v51 = vsel %vm435_vm0, %v409_v50, 0 }
  0x11   : > { %s346_s8 = scalar_select %p345_p6, %s1313_s21, 17 }
  0x12   : > { %s1425_s9 = smul.u32 54, %s1553_s22  ;;  %s1557_s12 = smov (!%p366_p8, %s363_s12), 17 }
  0x13   : > { %s1239_s11 = smul.u32 3, %s346_s8  ;;  %s1559_s21 = smov (!%p376_p9, %s1313_s21), 15 }
  0x14   : > { %s1241_s20 = smul.u32 3, %s1555_s10 }
  0x15   : > { %s349_s13 = sadd.s32 %s1425_s9, %s1239_s11  ;;  %s1242_s28 = smul.u32 3, %s1557_s12 }
  0x16   : > { %s1141_s14 = sshll.u32 %s349_s13, 2  ;;  %s359_s7 = sadd.s32 %s1241_s20, %s1425_s9 }
  0x17   : > { %s351_s19 = scalar_lea.vmem %s1535_s0, %s1141_s14  ;;  %s1142_s8 = sshll.u32 %s359_s7, 2 }
  0x18   : > { %v1285_v6 = vld [vmem:[%s351_s19] sm:$0xff]   ;;  %v1286_v7 = vld [vmem:[%s351_s19 + $0x8] ss:$0 sps:$4 sm:$0x11]   ;;  %s370_s10 = sadd.s32 %s1242_s28, %s1425_s9  ;;  %s361_s12 = scalar_lea.vmem %s1536_s1, %s1142_s8 }
  0x19   : > { %v420_v9 = vshrl.u32 %v1285_v6, 16  ;;  %v422_v10 = vshll.u32 %v1285_v6, 16  ;;  %v427_v11 = vshll.u32 %v1286_v7, 16  ;;  %1194 = vmatmul.mubr.msk.bf16.vlgmr.msra.gmra.mrb[0].mxu1 %vm431_vm2, %v1285_v6  ;;  %s1143_s16 = sshll.u32 %s370_s10, 2  ;;  %v1287_v18 = vld [vmem:[%s361_s12] sm:$0xff]   ;;  %v527_v22 = vrot.slane %v1285_v6, 1 }
  0x1a   : > { %1204 = vmatpush3.bf16.msra.mxu1 %v588_v8  ;;  %1205 = vmatprep.mubr.msk.bf16.mxu1 %vm1332_vm1, %v1331_v2  ;;  %s372_s19 = scalar_lea.vmem %s1537_s2, %s1143_s16  ;;  %v1288_v23 = vld [vmem:[%s361_s12 + $0x8] ss:$0 sps:$4 sm:$0x11]   ;;  %v528_v24 = vrot.slane %v1286_v7, 1  ;;  %v638_v25 = vshll.u32 %v1287_v18, 16  ;;  %v696_v27 = vrot.slane %v1287_v18, 1 }
  0x1b   : > { %v424_v12 = vrot.slane %v422_v10, 1  ;;  %v429_v13 = vrot.slane %v427_v11, 1  ;;  %1215 = vmatprep.subr.bf16.mxu1 %v1331_v2  ;;  %v1289_v21 = vld [vmem:[%s372_s19] sm:$0xff]   ;;  %v697_v28 = vrot.slane %v1288_v23, 1  ;;  %v636_v32 = vshrl.u32 %v1287_v18, 16  ;;  %s1144_s13 = sshll.u32 %s1559_s21, 1 }
  0x1c   : > { %v1290_v29 = vld [vmem:[%s372_s19 + $0x8] ss:$0 sps:$4 sm:$0x11]   ;;  %v807_v30 = vshll.u32 %v1289_v21, 16  ;;  %v529_v31 = vsel %vm526_vm4, %v527_v22, %v528_v24  ;;  %v640_v33 = vrot.slane %v638_v25, 1  ;;  %v643_v34 = vshll.u32 %v1288_v23, 16 }
  0x1d   : > { %v425_v16 = vor.u32 %v424_v12, %v420_v9  ;;  %v698_v37 = vsel %vm526_vm4, %v696_v27, %v697_v28  ;;  %v805_v38 = vshrl.u32 %v1289_v21, 16  ;;  %v812_v40 = vshll.u32 %v1290_v29, 16  ;;  %s1145_s10 = sshll.u32 %s1553_s22, 5  ;;  %s1147_s9 = sshll.u32 %s1553_s22, 4 }
  0x1e   : > { %v809_v39 = vrot.slane %v807_v30, 1  ;;  %v641_v42 = vor.u32 %v640_v33, %v636_v32  ;;  %v645_v43 = vrot.slane %v643_v34, 1  ;;  %v865_v52 = vrot.slane %v1289_v21, 1  ;;  %s380_s14 = sadd.s32 %s1145_s10, %s1144_s13  ;;  %s388_s20 = sadd.s32 %s1147_s9, %s1559_s21 }
  0x1f   : > { %v430_v19 = vsel %vm418_vm3, %v425_v16, %v429_v13  ;;  %v814_v46 = vrot.slane %v812_v40, 1  ;;  %v866_v53 = vrot.slane %v1290_v29, 1  ;;  %s1146_s15 = sshll.u32 %s380_s14, 3  ;;  %s1148_s28 = sshll.u32 %s388_s20, 1 }
  0x20   : > { %1188 = vmatmul.mubr.msk.bf16.vlgmr.msra.gmra.mrb[0].mxu0 %vm431_vm2, %v430_v19  ;;  %v810_v45 = vor.u32 %v809_v39, %v805_v38  ;;  %v646_v47 = vsel %vm418_vm3, %v641_v42, %v645_v43  ;;  %v1164_v38 = vld [vmem:[%s1539_s4] ss:$0 sm:$0xff]  ;;  %s382_s19 = scalar_lea.vmem %s1540_s5, %s1146_s15  ;;  %s390_s7 = scalar_lea.vmem %s1541_s6, %s1148_s28 }
  0x21   : > { %1198 = vmatpush3.bf16.msra.mxu0 %v534_v17  ;;  %1199 = vmatprep.mubr.msk.bf16.mxu0 %vm1332_vm1, %v1331_v2  ;;  %v867_v54 = vsel %vm526_vm4, %v865_v52, %v866_v53 }
  0x22   : > { %1209 = vmatprep.subr.bf16.mxu0 %v1331_v2  ;;  %1206 = vmatmul.mubr.msk.bf16.vlgmr.msra.gmra.mrb[4].mxu1 %vm431_vm2, %v1287_v18  ;;  %v815_v49 = vsel %vm418_vm3, %v810_v45, %v814_v46 }
  0x23   : > { %1216 = vmatpush3.bf16.msra.mxu1 %v703_v20  ;;  %1217 = vmatprep.mubr.msk.bf16.mxu1 %vm1332_vm1, %v1331_v2 }
  0x24   : > { %1227 = vmatprep.subr.bf16.mxu1 %v1331_v2 }
  0x28   : > { %1200 = vmatmul.mubr.msk.bf16.vlgmr.msra.gmra.mrb[4].mxu0 %vm431_vm2, %v529_v31 }
  0x29   : > { %1210 = vmatpush3.bf16.msra.mxu0 %v651_v36  ;;  %1211 = vmatprep.mubr.msk.bf16.mxu0 %vm1332_vm1, %v1331_v2 }
  0x2a   : > { %1221 = vmatprep.subr.bf16.mxu0 %v1331_v2  ;;  %1218 = vmatmul.mubr.msk.bf16.vlgmr.msra.gmra.mrb[8].mxu1 %vm431_vm2, %v698_v37 }
  0x2b   : > { %1228 = vmatpush3.bf16.msra.mxu1 %v820_v41  ;;  %1229 = vmatprep.mubr.msk.bf16.mxu1 %vm1332_vm1, %v1331_v2 }
  0x30   : > { %1212 = vmatmul.mubr.msk.bf16.vlgmr.msra.gmra.mrb[8].mxu0 %vm431_vm2, %v646_v47 }
  0x31   : > { %1222 = vmatpush3.bf16.msra.mxu0 %v757_v48  ;;  %1223 = vmatprep.mubr.msk.bf16.mxu0 %vm1332_vm1, %v1331_v2 }
  0x32   : > { %1233 = vmatprep.subr.bf16.mxu0 %v1331_v2  ;;  %1230 = vmatmul.mubr.msk.bf16.vlgmr.msra.gmra.mrb[12].mxu1 %vm431_vm2, %v815_v49 }
  0x38   : > { %1224 = vmatmul.mubr.msk.bf16.vlgmr.msra.gmra.mrb[12].mxu0 %vm431_vm2, %v1289_v21 }
  0x39   : > { %1234 = vmatpush3.bf16.msra.mxu0 %v872_v51  ;;  %1235 = vmatprep.mubr.msk.bf16.mxu0 %vm1332_vm1, %v1331_v2 }
  0x40   : > { %1236 = vmatmul.mubr.msk.bf16.vlgmr.msra.gmra.mrb[16].mxu0 %vm431_vm2, %v867_v54 }
  0xec   : > { %v519_v55 = vpop.f32.mrb[0].mxu1 }
  0xed   : > { %v1195_v56 = vpop.f32.mrb[1].mxu1 }
  0xee   : > { %v522_v57 = vpop.f32.mrb[2].mxu1 }
  0xef   : > { %v1196_v58 = vpop.f32.mrb[3].mxu1 }
  0xf3   : > { %v473_v59 = vpop.f32.mrb[0].mxu0 }
  0xf4   : > { %v520_v60 = vadd.f32 %v519_v55, %v473_v59  ;;  %v1189_v61 = vpop.f32.mrb[1].mxu0 }
  0xf5   : > { %v476_v62 = vpop.f32.mrb[2].mxu0  ;;  %v624_v63 = vpop.f32.mrb[4].mxu1 }
  0xf6   : > { %v523_v0 = vadd.f32 %v522_v57, %v476_v62  ;;  %v1190_v1 = vpop.f32.mrb[3].mxu0  ;;  %v1207_v3 = vpop.f32.mrb[5].mxu1 }
  0xf7   : > { %v627_v4 = vpop.f32.mrb[6].mxu1 }
  0xf8   : > { %v1208_v2 = vpop.f32.mrb[7].mxu1 }
  0xfb   : > { %v570_v5 = vpop.f32.mrb[4].mxu0 }
  0xfc   : > { %v577_v6 = vadd.f32 %v570_v5, %v520_v60  ;;  %v1201_v7 = vpop.f32.mrb[5].mxu0 }
  0xfd   : > { %v573_v8 = vpop.f32.mrb[6].mxu0  ;;  %v739_v9 = vpop.f32.mrb[8].mxu1 }
  0xfe   : > { %v578_v10 = vadd.f32 %v573_v8, %v523_v0  ;;  %v631_v11 = vadd.f32 %v624_v63, %v577_v6  ;;  %v1202_v12 = vpop.f32.mrb[7].mxu0  ;;  %v1219_v13 = vpop.f32.mrb[9].mxu1 }
  0xff   : > { %v742_v14 = vpop.f32.mrb[10].mxu1 }
 0x100   : > { %v632_v15 = vadd.f32 %v627_v4, %v578_v10  ;;  %v1220_v16 = vpop.f32.mrb[11].mxu1 }
 0x103   : > { %v687_v17 = vpop.f32.mrb[8].mxu0 }
 0x104   : > { %v694_v18 = vadd.f32 %v687_v17, %v631_v11  ;;  %v1213_v19 = vpop.f32.mrb[9].mxu0 }
 0x105   : > { %v690_v20 = vpop.f32.mrb[10].mxu0  ;;  %v856_v21 = vpop.f32.mrb[12].mxu1 }
 0x106   : > { %v695_v22 = vadd.f32 %v690_v20, %v632_v15  ;;  %v746_v23 = vadd.f32 %v739_v9, %v694_v18  ;;  %v1214_v24 = vpop.f32.mrb[11].mxu0  ;;  %v1231_v25 = vpop.f32.mrb[13].mxu1 }
 0x107   : > { %v859_v26 = vpop.f32.mrb[14].mxu1 }
 0x108   : > { %v747_v27 = vadd.f32 %v742_v14, %v695_v22  ;;  %v1232_v28 = vpop.f32.mrb[15].mxu1 }
 0x10b   : > { %v793_v29 = vpop.f32.mrb[12].mxu0 }
 0x10c   : > { %v800_v30 = vadd.f32 %v793_v29, %v746_v23  ;;  %v1225_v31 = vpop.f32.mrb[13].mxu0 }
 0x10d   : > { %v796_v32 = vpop.f32.mrb[14].mxu0 }
 0x10e   : > { %v801_v33 = vadd.f32 %v796_v32, %v747_v27  ;;  %v863_v34 = vadd.f32 %v856_v21, %v800_v30  ;;  %v1226_v35 = vpop.f32.mrb[15].mxu0 }
 0x110   : > { %v864_v36 = vadd.f32 %v859_v26, %v801_v33 }
 0x113   : > { %v908_v37 = vpop.f32.mrb[16].mxu0 }
 0x114   : > { %v915_v39 = vadd.f32 %v908_v37, %v863_v34  ;;  %v1237_v40 = vpop.f32.mrb[17].mxu0 }
 0x115   : > { %v911_v41 = vpop.f32.mrb[18].mxu0 }
 0x116   : > { %v924_v42 = vadd.f32 %v1164_v38, %v915_v39  ;;  %v916_v43 = vadd.f32 %v911_v41, %v864_v36  ;;  %v1238_v44 = vpop.f32.mrb[19].mxu0 }
 0x118   : > { %927 = vst.msk [vmem:[%s382_s19] sm:$0xff] %vm926_vm5, %v924_v42  ;;  %v940_v45 = vmul.f32 %v924_v42, %v924_v42  ;;  %v925_v46 = vadd.f32 %v1164_v38, %v916_v43  ;;  %v929_v47 = vsel %vm926_vm5, %v924_v42, 0.0 }
 0x11a   : > { %928 = vst.msk [vmem:[%s382_s19 + $0x8] sm:$0xff] %vm926_vm5, %v925_v46  ;;  %v930_v48 = vsel %vm926_vm5, %v925_v46, 0.0  ;;  %v941_v49 = vmul.f32 %v925_v46, %v925_v46  ;;  %v942_v51 = vsel %vm926_vm5, %v940_v45, 0.0 }
 0x11b   : > { %v931_v50 = vadd.f32 %v930_v48, %v929_v47 }
 0x11c   : > { %v943_v52 = vsel %vm926_vm5, %v941_v49, 0.0 }
 0x11d   : > { %v932_v53 = vrot.slane %v931_v50, 4  ;;  %v944_v54 = vadd.f32 %v943_v52, %v942_v51 }
 0x11f   : > { %v933_v55 = vadd.f32 %v932_v53, %v931_v50  ;;  %v945_v56 = vrot.slane %v944_v54, 4 }
 0x121   : > { %v934_v57 = vrot.slane %v933_v55, 2  ;;  %v946_v58 = vadd.f32 %v945_v56, %v944_v54 }
 0x123   : > { %v935_v59 = vadd.f32 %v934_v57, %v933_v55  ;;  %v947_v60 = vrot.slane %v946_v58, 2 }
 0x125   : > { %v936_v61 = vrot.slane %v935_v59, 1  ;;  %v948_v62 = vadd.f32 %v947_v60, %v946_v58 }
 0x127   : > { %v937_v63 = vadd.f32 %v936_v61, %v935_v59  ;;  %v949_v0 = vrot.slane %v948_v62, 1 }
 0x129   : > { %939 = vst.msk [vmem:[%s390_s7] sm:$0x1] %vm938_vm6, %v937_v63  ;;  %v950_v1 = vadd.f32 %v949_v0, %v948_v62 }
 0x12b   : > { %951 = vst.msk [vmem:[%s390_s7 + $0x1] sm:$0x1] %vm938_vm6, %v950_v1 }
 0x12c PF: > { %s17_s25 = sadd.s32 1, %s1329_s25   ;;  %s1542_s21 = smov %s1321_s23 }
 0x12d   : > { %p14_p10 = scmp.ge.s32.totalorder %s17_s25, 34   ;;  %s1543_s22 = smov %s1325_s24 }
 0x12e   : > { %s1544_s23 = smov %s1547_s26  ;;  %s1545_s24 = smov %s1551_s27 }
 0x12f   :  { %16 = sbr.rel (!%p14_p10) target bundleno = 3 (0x3), region = 88 }

// kernel: up_forward.8
= control target key start
LH: loop header
LB: loop body
LE: loop exit
PB: predicated region body
PF: predicated region fallthrough
CT: control target
= control target key end

     0   :  { %s1387_s21 = smov 0   ;;  %s1389_s22 = smov 0   ;;  %s1544_s0 = inlined_call_operand.vmem [shape: bf16[2,18,18,4], index: 0, kind: input, shape index: {}, may-alias: {0,1,2}]   ;;  %s1545_s1 = inlined_call_operand.vmem [shape: bf16[2,18,18,4], index: 1, kind: input, shape index: {}, may-alias: {0,1,2}]   ;;  %s1546_s2 = inlined_call_operand.vmem [shape: bf16[2,18,18,4], index: 2, kind: input, shape index: {}, may-alias: {0,1,2}]   ;;  %s1547_s3 = inlined_call_operand.vmem [shape: bf16[36,4], index: 3, kind: input, shape index: {}]   ;;  %s1548_s4 = inlined_call_operand.vmem [shape: f32[1,4], index: 4, kind: input, shape index: {}]   ;;  %s1549_s5 = inlined_call_operand.vmem [shape: f32[2,16,16,4], index: 5, kind: output, shape index: {0}]   ;;  %s1550_s6 = inlined_call_operand.vmem [shape: f32[2,16,2,4], index: 6, kind: output, shape index: {1}]  }
   0x1   :  { %s1391_s23 = smov 0   ;;  %s1393_s24 = smov 0  }
   0x2   :  { %s1395_s25 = smov 0  }
   0x3 LB: > { %s26_s26 = sadd.s32 1, %s1340_s23  ;;  %s29_s27 = sadd.s32 1, %s1344_s24  ;;  %s1348_s25 = sphi %s1395_s25, %s17_s25   ;;  %s1344_s24 = sphi %s1393_s24, %s1554_s24   ;;  %s1340_s23 = sphi %s1391_s23, %s1553_s23   ;;  %s1336_s22 = sphi %s1389_s22, %s1552_s22   ;;  %s1332_s21 = sphi %s1387_s21, %s1551_s21  }
   0x4   : > { %p27_p0 = scmp.ge.s32.totalorder %s26_s26, 16  ;;  %p1151_p1 = scmp.ge.s32.totalorder %s1348_s25, 1 }
   0x5   : > { %p277_p2 = scmp.lt.s32.totalorder %s1348_s25, 33 }
   0x6   : > { %s1556_s26 = smov (%p27_p0, %s26_s26), 0  ;;  %s1558_s27 = smov (!%p27_p0, %s29_s27), %s1344_s24 }
   0x7   : > { %p278_p3 = pnand %p1151_p1, %p277_p2  ;;  %p31_p4 = scmp.ge.s32.totalorder %s1558_s27, 2 }
   0x8   : > { %v401_v0 = vld [vmem:[%s1547_s3] sm:$0xf] (!%p278_p3)  ;;  %vm435_vm0 = vcmask (!%p278_p3), 1041408   ;;  %p343_p5 = scmp.lt.s32.totalorder (!%p278_p3), %s1336_s22, 1  ;;  %v1350_v1 = vmov (!%p278_p3), 0.0   ;;  %p345_p6 = scmp.lt.s32.totalorder (!%p278_p3), %s1332_s21, 17 }
   0x9   : > { %s1560_s27 = smov (%p31_p4, %s1558_s27), 0  ;;  %281 = sbr.rel (%p278_p3) target bundleno = 300 (0x12c), region = 40 }
   0xa   : > { %1200 = vmatprep.subr.bf16.mxu0 (!%p278_p3), %v1350_v1  ;;  %v1162_v2 = vcombine.low (!%p278_p3), %v401_v0, %v401_v0  ;;  %1206 = vmatprep.subr.bf16.mxu1 (!%p278_p3), %v1350_v1  ;;  %v483_v3 = vsel (!%p278_p3), %vm435_vm0, %v401_v0, 0  ;;  %s352_s30 = sadd.s32 (!%p278_p3), 1, %s1332_s21  ;;  %vm1351_vm1 = vmmov (!%p278_p3), 0   ;;  %v402_v4 = vld [vmem:[%s1547_s3 + $0x4] sm:$0xf] (!%p278_p3)  ;;  %s363_s13 = sadd.s32 (!%p278_p3), 2, %s1332_s21 }
   0xb   : > { %1207 = vmatpush3.bf16.msra.mxu1 (!%p278_p3), %v483_v3  ;;  %1202 = vmatprep.mubr.msk.bf16.mxu0 (!%p278_p3), %vm1351_vm1, %v1350_v1  ;;  %v1167_v6 = vcombine.low (!%p278_p3), %v402_v4, %v402_v4  ;;  %p355_p7 = scmp.lt.s32.totalorder (!%p278_p3), %s352_s30, 17  ;;  %vm431_vm2 = vcmask (!%p278_p3), 31744   ;;  %v403_v10 = vld [vmem:[%s1547_s3 + $0x8] sm:$0xf] (!%p278_p3)  ;;  %p366_p8 = scmp.lt.s32.totalorder (!%p278_p3), %s363_s13, 17  ;;  %v534_v23 = vsel (!%p278_p3), %vm435_vm0, %v402_v4, 0 }
   0xc   : > { %v430_v5 = vrot.slane (!%p278_p3), %v1162_v2, 2  ;;  %1208 = vmatprep.mubr.msk.bf16.mxu1 (!%p278_p3), %vm1351_vm1, %v1350_v1  ;;  %1218 = vmatprep.subr.bf16.mxu1 (!%p278_p3), %v1350_v1  ;;  %v1171_v13 = vcombine.low (!%p278_p3), %v403_v10, %v403_v10  ;;  %vm414_vm3 = vsmask.f32 (!%p278_p3), 7424  ;;  %v404_v22 = vld [vmem:[%s1547_s3 + $0xc] sm:$0xf] (!%p278_p3)  ;;  %vm526_vm4 = vcmask (!%p278_p3), 1046528  }
   0xd   : > { %v587_v8 = vrot.slane (!%p278_p3), %v1167_v6, 2  ;;  %v1176_v26 = vcombine.low (!%p278_p3), %v404_v22, %v404_v22  ;;  %v655_v41 = vsel (!%p278_p3), %vm435_vm0, %v403_v10, 0  ;;  %v765_v52 = vsel (!%p278_p3), %vm435_vm0, %v404_v22, 0  ;;  %v405_v54 = vld [vmem:[%s1547_s3 + $0x10] sm:$0x3] (!%p278_p3)  ;;  %p376_p9 = scmp.lt.s32.totalorder (!%p278_p3), %s1332_s21, 15 }
   0xe   : > { %v437_v7 = vsel (!%p278_p3), %vm435_vm0, %v430_v5, 0  ;;  %v706_v19 = vrot.slane (!%p278_p3), %v1171_v13, 2  ;;  %v884_v55 = vsel (!%p278_p3), %vm435_vm0, %v405_v54, 0  ;;  %vm949_vm5 = vcmask (!%p278_p3), 24576  }
   0xf   : > { %1201 = vmatpush3.bf16.msra.mxu0 (!%p278_p3), %v437_v7  ;;  %v592_v9 = vsel (!%p278_p3), %vm435_vm0, %v587_v8, 0  ;;  %v827_v35 = vrot.slane (!%p278_p3), %v1176_v26, 2 }
  0x10   : > { %s1562_s22 = smov (!%p343_p5, %s1336_s22), 1  ;;  %s1564_s30 = smov (!%p355_p7, %s352_s30), 17  ;;  %1212 = vmatprep.subr.bf16.mxu0 %v1350_v1  ;;  %v711_v25 = vsel %vm435_vm0, %v706_v19, 0 }
  0x11   : > { %s346_s9 = scalar_select %p345_p6, %s1332_s21, 17  ;;  %v832_v46 = vsel %vm435_vm0, %v827_v35, 0 }
  0x12   : > { %s1439_s10 = smul.u32 54, %s1562_s22  ;;  %s1566_s13 = smov (!%p366_p8, %s363_s13), 17 }
  0x13   : > { %s1254_s11 = smul.u32 3, %s346_s9  ;;  %s1568_s21 = smov (!%p376_p9, %s1332_s21), 15 }
  0x14   : > { %s1256_s15 = smul.u32 3, %s1564_s30  ;;  %s1155_s19 = sshll.u32 %s1568_s21, 1 }
  0x15   : > { %s349_s12 = sadd.s32 %s1439_s10, %s1254_s11  ;;  %s1156_s20 = sshll.u32 %s1562_s22, 5 }
  0x16   : > { %s1152_s14 = sshll.u32 %s349_s12, 2  ;;  %s359_s28 = sadd.s32 %s1256_s15, %s1439_s10 }
  0x17   : > { %s351_s18 = scalar_lea.vmem %s1544_s0, %s1152_s14  ;;  %s1153_s29 = sshll.u32 %s359_s28, 2 }
  0x18   : > { %v1301_v11 = vld [vmem:[%s351_s18] sm:$0xff]   ;;  %v1302_v12 = vld [vmem:[%s351_s18 + $0x8] ss:$0 sps:$4 sm:$0x11]   ;;  %s361_s30 = scalar_lea.vmem %s1545_s1, %s1153_s29  ;;  %s1257_s12 = smul.u32 3, %s1566_s13 }
  0x19   : > { %v416_v14 = vshrl.u32 %v1301_v11, 16  ;;  %v418_v15 = vshll.u32 %v1301_v11, 16  ;;  %v423_v16 = vshll.u32 %v1302_v12, 16  ;;  %1209 = vmatmul.mubr.msk.bf16.vlgmr.msra.gmra.mrb[0].mxu1 %vm431_vm2, %v1301_v11  ;;  %v1305_v21 = vld [vmem:[%s361_s30] sm:$0xff]   ;;  %v527_v27 = vrot.slane %v1301_v11, 1  ;;  %s380_s28 = sadd.s32 %s1156_s20, %s1155_s19 }
  0x1a   : > { %1219 = vmatpush3.bf16.msra.mxu1 %v592_v9  ;;  %1220 = vmatprep.mubr.msk.bf16.mxu1 %vm1351_vm1, %v1350_v1  ;;  %s370_s14 = sadd.s32 %s1257_s12, %s1439_s10  ;;  %v528_v28 = vrot.slane %v1302_v12, 1  ;;  %v1306_v29 = vld [vmem:[%s361_s30 + $0x8] ss:$0 sps:$4 sm:$0x11]   ;;  %v642_v30 = vshll.u32 %v1305_v21, 16  ;;  %v700_v31 = vrot.slane %v1305_v21, 1 }
  0x1b   : > { %v420_v17 = vrot.slane %v418_v15, 1  ;;  %v425_v18 = vrot.slane %v423_v16, 1  ;;  %1230 = vmatprep.subr.bf16.mxu1 %v1350_v1  ;;  %s1154_s15 = sshll.u32 %s370_s14, 2  ;;  %v701_v33 = vrot.slane %v1306_v29, 1  ;;  %v640_v38 = vshrl.u32 %v1305_v21, 16  ;;  %s1157_s29 = sshll.u32 %s380_s28, 3 }
  0x1c   : > { %s372_s17 = scalar_lea.vmem %s1546_s2, %s1154_s15  ;;  %v529_v37 = vsel %vm526_vm4, %v527_v27, %v528_v28  ;;  %v644_v39 = vrot.slane %v642_v30, 1  ;;  %v647_v40 = vshll.u32 %v1306_v29, 16  ;;  %s382_s11 = scalar_lea.vmem %s1549_s5, %s1157_s29 }
  0x1d   : > { %v421_v20 = vor.u32 %v420_v17, %v416_v14  ;;  %v1308_v32 = vld [vmem:[%s372_s17] sm:$0xff]   ;;  %v1309_v34 = vld [vmem:[%s372_s17 + $0x8] ss:$0 sps:$4 sm:$0x11]   ;;  %v702_v42 = vsel %vm526_vm4, %v700_v31, %v701_v33  ;;  %s1158_s12 = sshll.u32 %s1562_s22, 4 }
  0x1e   : > { %v815_v36 = vshll.u32 %v1308_v32, 16  ;;  %v813_v43 = vshrl.u32 %v1308_v32, 16  ;;  %v820_v45 = vshll.u32 %v1309_v34, 16  ;;  %v645_v47 = vor.u32 %v644_v39, %v640_v38  ;;  %s388_s14 = sadd.s32 %s1158_s12, %s1568_s21 }
  0x1f   : > { %v426_v24 = vsel %vm414_vm3, %v421_v20, %v425_v18  ;;  %v649_v48 = vrot.slane %v647_v40, 1  ;;  %v877_v56 = vrot.slane %v1308_v32, 1  ;;  %v878_v57 = vrot.slane %v1309_v34, 1  ;;  %s1159_s15 = sshll.u32 %s388_s14, 1 }
  0x20   : > { %1203 = vmatmul.mubr.msk.bf16.vlgmr.msra.gmra.mrb[0].mxu0 %vm431_vm2, %v426_v24  ;;  %v817_v44 = vrot.slane %v815_v36, 1  ;;  %v822_v50 = vrot.slane %v820_v45, 1  ;;  %s390_s17 = scalar_lea.vmem %s1550_s6, %s1159_s15 }
  0x21   : > { %1213 = vmatpush3.bf16.msra.mxu0 %v534_v23  ;;  %1214 = vmatprep.mubr.msk.bf16.mxu0 %vm1351_vm1, %v1350_v1  ;;  %v650_v51 = vsel %vm414_vm3, %v645_v47, %v649_v48  ;;  %v879_v58 = vsel %vm526_vm4, %v877_v56, %v878_v57 }
  0x22   : > { %1224 = vmatprep.subr.bf16.mxu0 %v1350_v1  ;;  %1221 = vmatmul.mubr.msk.bf16.vlgmr.msra.gmra.mrb[4].mxu1 %vm431_vm2, %v1305_v21  ;;  %v818_v49 = vor.u32 %v817_v44, %v813_v43 }
  0x23   : > { %1231 = vmatpush3.bf16.msra.mxu1 %v711_v25  ;;  %1232 = vmatprep.mubr.msk.bf16.mxu1 %vm1351_vm1, %v1350_v1 }
  0x24   : > { %1242 = vmatprep.subr.bf16.mxu1 %v1350_v1  ;;  %v823_v53 = vsel %vm414_vm3, %v818_v49, %v822_v50 }
  0x28   : > { %1215 = vmatmul.mubr.msk.bf16.vlgmr.msra.gmra.mrb[4].mxu0 %vm431_vm2, %v529_v37 }
  0x29   : > { %1225 = vmatpush3.bf16.msra.mxu0 %v655_v41  ;;  %1226 = vmatprep.mubr.msk.bf16.mxu0 %vm1351_vm1, %v1350_v1 }
  0x2a   : > { %1236 = vmatprep.subr.bf16.mxu0 %v1350_v1  ;;  %1233 = vmatmul.mubr.msk.bf16.vlgmr.msra.gmra.mrb[8].mxu1 %vm431_vm2, %v702_v42  ;;  %v1179_v42 = vld [vmem:[%s1548_s4] ss:$0 sm:$0xff] }
  0x2b   : > { %1243 = vmatpush3.bf16.msra.mxu1 %v832_v46  ;;  %1244 = vmatprep.mubr.msk.bf16.mxu1 %vm1351_vm1, %v1350_v1 }
  0x30   : > { %1227 = vmatmul.mubr.msk.bf16.vlgmr.msra.gmra.mrb[8].mxu0 %vm431_vm2, %v650_v51 }
  0x31   : > { %1237 = vmatpush3.bf16.msra.mxu0 %v765_v52  ;;  %1238 = vmatprep.mubr.msk.bf16.mxu0 %vm1351_vm1, %v1350_v1 }
  0x32   : > { %1248 = vmatprep.subr.bf16.mxu0 %v1350_v1  ;;  %1245 = vmatmul.mubr.msk.bf16.vlgmr.msra.gmra.mrb[12].mxu1 %vm431_vm2, %v823_v53 }
  0x38   : > { %1239 = vmatmul.mubr.msk.bf16.vlgmr.msra.gmra.mrb[12].mxu0 %vm431_vm2, %v1308_v32 }
  0x39   : > { %1249 = vmatpush3.bf16.msra.mxu0 %v884_v55  ;;  %1250 = vmatprep.mubr.msk.bf16.mxu0 %vm1351_vm1, %v1350_v1 }
  0x40   : > { %1251 = vmatmul.mubr.msk.bf16.vlgmr.msra.gmra.mrb[16].mxu0 %vm431_vm2, %v879_v58 }
  0xec   : > { %v519_v59 = vpop.f32.mrb[0].mxu1 }
  0xed   : > { %v1210_v60 = vpop.f32.mrb[1].mxu1 }
  0xee   : > { %v522_v61 = vpop.f32.mrb[2].mxu1 }
  0xef   : > { %v1211_v62 = vpop.f32.mrb[3].mxu1 }
  0xf3   : > { %v473_v63 = vpop.f32.mrb[0].mxu0 }
  0xf4   : > { %v520_v0 = vadd.f32 %v519_v59, %v473_v63  ;;  %v1204_v2 = vpop.f32.mrb[1].mxu0 }
  0xf5   : > { %v476_v3 = vpop.f32.mrb[2].mxu0  ;;  %v628_v4 = vpop.f32.mrb[4].mxu1 }
  0xf6   : > { %v523_v5 = vadd.f32 %v522_v61, %v476_v3  ;;  %v1205_v6 = vpop.f32.mrb[3].mxu0  ;;  %v1222_v7 = vpop.f32.mrb[5].mxu1 }
  0xf7   : > { %v631_v8 = vpop.f32.mrb[6].mxu1 }
  0xf8   : > { %v1223_v1 = vpop.f32.mrb[7].mxu1 }
  0xfb   : > { %v570_v9 = vpop.f32.mrb[4].mxu0 }
  0xfc   : > { %v577_v10 = vadd.f32 %v570_v9, %v520_v0  ;;  %v1216_v11 = vpop.f32.mrb[5].mxu0 }
  0xfd   : > { %v573_v12 = vpop.f32.mrb[6].mxu0  ;;  %v747_v13 = vpop.f32.mrb[8].mxu1 }
  0xfe   : > { %v578_v14 = vadd.f32 %v573_v12, %v523_v5  ;;  %v635_v15 = vadd.f32 %v628_v4, %v577_v10  ;;  %v1217_v16 = vpop.f32.mrb[7].mxu0  ;;  %v1234_v17 = vpop.f32.mrb[9].mxu1 }
  0xff   : > { %v750_v18 = vpop.f32.mrb[10].mxu1 }
 0x100   : > { %v636_v19 = vadd.f32 %v631_v8, %v578_v14  ;;  %v1235_v20 = vpop.f32.mrb[11].mxu1 }
 0x103   : > { %v691_v21 = vpop.f32.mrb[8].mxu0 }
 0x104   : > { %v698_v22 = vadd.f32 %v691_v21, %v635_v15  ;;  %v1228_v23 = vpop.f32.mrb[9].mxu0 }
 0x105   : > { %v694_v24 = vpop.f32.mrb[10].mxu0  ;;  %v868_v25 = vpop.f32.mrb[12].mxu1 }
 0x106   : > { %v699_v26 = vadd.f32 %v694_v24, %v636_v19  ;;  %v754_v27 = vadd.f32 %v747_v13, %v698_v22  ;;  %v1229_v28 = vpop.f32.mrb[11].mxu0  ;;  %v1246_v29 = vpop.f32.mrb[13].mxu1 }
 0x107   : > { %v871_v30 = vpop.f32.mrb[14].mxu1 }
 0x108   : > { %v755_v31 = vadd.f32 %v750_v18, %v699_v26  ;;  %v1247_v32 = vpop.f32.mrb[15].mxu1 }
 0x10b   : > { %v801_v33 = vpop.f32.mrb[12].mxu0 }
 0x10c   : > { %v808_v34 = vadd.f32 %v801_v33, %v754_v27  ;;  %v1240_v35 = vpop.f32.mrb[13].mxu0 }
 0x10d   : > { %v804_v36 = vpop.f32.mrb[14].mxu0 }
 0x10e   : > { %v809_v37 = vadd.f32 %v804_v36, %v755_v31  ;;  %v875_v38 = vadd.f32 %v868_v25, %v808_v34  ;;  %v1241_v39 = vpop.f32.mrb[15].mxu0 }
 0x110   : > { %v876_v40 = vadd.f32 %v871_v30, %v809_v37 }
 0x113   : > { %v920_v41 = vpop.f32.mrb[16].mxu0 }
 0x114   : > { %v927_v43 = vadd.f32 %v920_v41, %v875_v38  ;;  %v1252_v44 = vpop.f32.mrb[17].mxu0 }
 0x115   : > { %v923_v45 = vpop.f32.mrb[18].mxu0 }
 0x116   : > { %v936_v46 = vadd.f32 %v1179_v42, %v927_v43  ;;  %v928_v47 = vadd.f32 %v923_v45, %v876_v40  ;;  %v1253_v48 = vpop.f32.mrb[19].mxu0 }
 0x118   : > { %938 = vst.msk [vmem:[%s382_s11] sm:$0xff] %vm431_vm2, %v936_v46  ;;  %v951_v49 = vmul.f32 %v936_v46, %v936_v46  ;;  %v937_v50 = vadd.f32 %v1179_v42, %v928_v47  ;;  %v940_v51 = vsel %vm431_vm2, %v936_v46, 0.0 }
 0x11a   : > { %939 = vst.msk [vmem:[%s382_s11 + $0x8] sm:$0xff] %vm431_vm2, %v937_v50  ;;  %v941_v52 = vsel %vm431_vm2, %v937_v50, 0.0  ;;  %v952_v53 = vmul.f32 %v937_v50, %v937_v50  ;;  %v953_v55 = vsel %vm431_vm2, %v951_v49, 0.0 }
 0x11b   : > { %v942_v54 = vadd.f32 %v941_v52, %v940_v51 }
 0x11c   : > { %v954_v56 = vsel %vm431_vm2, %v952_v53, 0.0 }
 0x11d   : > { %v943_v57 = vrot.slane %v942_v54, 4  ;;  %v955_v58 = vadd.f32 %v954_v56, %v953_v55 }
 0x11f   : > { %v944_v59 = vadd.f32 %v943_v57, %v942_v54  ;;  %v956_v60 = vrot.slane %v955_v58, 4 }
 0x121   : > { %v945_v61 = vrot.slane %v944_v59, 2  ;;  %v957_v62 = vadd.f32 %v956_v60, %v955_v58 }
 0x123   : > { %v946_v63 = vadd.f32 %v945_v61, %v944_v59  ;;  %v958_v0 = vrot.slane %v957_v62, 2 }
 0x125   : > { %v947_v2 = vrot.slane %v946_v63, 1  ;;  %v959_v3 = vadd.f32 %v958_v0, %v957_v62 }
 0x127   : > { %v948_v4 = vadd.f32 %v947_v2, %v946_v63  ;;  %v960_v5 = vrot.slane %v959_v3, 1 }
 0x129   : > { %950 = vst.msk [vmem:[%s390_s17] sm:$0x1] %vm949_vm5, %v948_v4  ;;  %v961_v6 = vadd.f32 %v960_v5, %v959_v3 }
 0x12b   : > { %962 = vst.msk [vmem:[%s390_s17 + $0x1] sm:$0x1] %vm949_vm5, %v961_v6 }
 0x12c PF: > { %s17_s25 = sadd.s32 1, %s1348_s25   ;;  %s1551_s21 = smov %s1340_s23 }
 0x12d   : > { %p14_p10 = scmp.ge.s32.totalorder %s17_s25, 34   ;;  %s1552_s22 = smov %s1344_s24 }
 0x12e   : > { %s1553_s23 = smov %s1556_s26  ;;  %s1554_s24 = smov %s1560_s27 }
 0x12f   :  { %16 = sbr.rel (!%p14_p10) target bundleno = 3 (0x3), region = 88 }

// kernel: up_forward.9
= control target key start
LH: loop header
LB: loop body
LE: loop exit
PB: predicated region body
PF: predicated region fallthrough
CT: control target
= control target key end

     0   :  { %vm284_vm0 = vcmask 31744   ;;  %s961_s0 = inlined_call_operand.vmem [shape: f32[512,4], index: 0, kind: input, shape index: {}]   ;;  %s962_s1 = inlined_call_operand.vmem [shape: f32[1,4], index: 1, kind: input, shape index: {}]   ;;  %s963_s2 = inlined_call_operand.vmem [shape: f32[1,4], index: 2, kind: input, shape index: {}]   ;;  %s964_s3 = inlined_call_operand.vmem [shape: f32[512,4], index: 3, kind: output, shape index: {}]  }
   0x1   :  { %v14_v0 = vld [vmem:[%s961_s0] sm:$0xff]  ;;  %v15_v4 = vld [vmem:[%s961_s0 + $0x8] sm:$0xff]  ;;  %v16_v5 = vld [vmem:[%s961_s0 + $0x10] sm:$0xff] }
   0x2   :  { %v381_v1 = vld [vmem:[%s962_s1] ss:$0 sm:$0xff]  ;;  %v17_v6 = vld [vmem:[%s961_s0 + $0x18] sm:$0xff]  ;;  %v19_v11 = vld [vmem:[%s961_s0 + $0x28] sm:$0xff] }
   0x3   :  { %v386_v2 = vld [vmem:[%s963_s2] ss:$0 sm:$0xff]  ;;  %v85_v3 = vmul.f32 %v381_v1, %v14_v0  ;;  %v86_v7 = vmul.f32 %v381_v1, %v15_v4  ;;  %v87_v8 = vmul.f32 %v381_v1, %v16_v5  ;;  %v88_v9 = vmul.f32 %v381_v1, %v17_v6  ;;  %v20_v12 = vld [vmem:[%s961_s0 + $0x30] sm:$0xff]  ;;  %v21_v17 = vld [vmem:[%s961_s0 + $0x38] sm:$0xff] }
   0x4   :  { %v18_v10 = vld [vmem:[%s961_s0 + $0x20] sm:$0xff]  ;;  %v90_v15 = vmul.f32 %v381_v1, %v19_v11  ;;  %v91_v16 = vmul.f32 %v381_v1, %v20_v12  ;;  %v92_v21 = vmul.f32 %v381_v1, %v21_v17  ;;  %v23_v27 = vld [vmem:[%s961_s0 + $0x48] sm:$0xff]  ;;  %v24_v28 = vld [vmem:[%s961_s0 + $0x50] sm:$0xff] }
   0x5   :  { %v156_v13 = vadd.f32 %v386_v2, %v85_v3  ;;  %v89_v14 = vmul.f32 %v381_v1, %v18_v10  ;;  %v157_v18 = vadd.f32 %v386_v2, %v86_v7  ;;  %v158_v19 = vadd.f32 %v386_v2, %v87_v8  ;;  %v22_v22 = vld [vmem:[%s961_s0 + $0x40] sm:$0xff]  ;;  %v25_v29 = vld [vmem:[%s961_s0 + $0x58] sm:$0xff]  ;;  %v27_v35 = vld [vmem:[%s961_s0 + $0x68] sm:$0xff] }
   0x6   :  { %v159_v20 = vadd.f32 %v386_v2, %v88_v9  ;;  %v161_v25 = vadd.f32 %v386_v2, %v90_v15  ;;  %v162_v26 = vadd.f32 %v386_v2, %v91_v16  ;;  %v163_v33 = vadd.f32 %v386_v2, %v92_v21  ;;  %v26_v34 = vld [vmem:[%s961_s0 + $0x60] sm:$0xff]  ;;  %v28_v36 = vld [vmem:[%s961_s0 + $0x70] sm:$0xff]  ;;  %v29_v41 = vld [vmem:[%s961_s0 + $0x78] sm:$0xff] }
   0x7   :  { %v220_v23 = vmax.f32 %v156_v13, 0.0  ;;  %v160_v24 = vadd.f32 %v386_v2, %v89_v14  ;;  %v221_v30 = vmax.f32 %v157_v18, 0.0  ;;  %v222_v31 = vmax.f32 %v158_v19, 0.0  ;;  %v30_v54 = vld [vmem:[%s961_s0 + $0x80] sm:$0xff]  ;;  %v31_v59 = vld [vmem:[%s961_s0 + $0x88] sm:$0xff]  ;;  %v32_v60 = vld [vmem:[%s961_s0 + $0x90] sm:$0xff] }
   0x8   :  { %v223_v32 = vmax.f32 %v159_v20, 0.0  ;;  %v225_v38 = vmax.f32 %v161_v25, 0.0  ;;  %v226_v39 = vmax.f32 %v162_v26, 0.0  ;;  %v93_v40 = vmul.f32 %v381_v1, %v22_v22  ;;  %v33_v61 = vld [vmem:[%s961_s0 + $0x98] sm:$0xff]  ;;  %v34_v4 = vld [vmem:[%s961_s0 + $0xa0] sm:$0xff]  ;;  %v35_v5 = vld [vmem:[%s961_s0 + $0xa8] sm:$0xff] }
   0x9   :  { %285 = vst.msk [vmem:[%s964_s3] sm:$0xff] %vm284_vm0, %v220_v23  ;;  %v224_v37 = vmax.f32 %v160_v24, 0.0  ;;  %286 = vst.msk [vmem:[%s964_s3 + $0x8] sm:$0xff] %vm284_vm0, %v221_v30  ;;  %v227_v42 = vmax.f32 %v163_v33, 0.0  ;;  %v94_v43 = vmul.f32 %v381_v1, %v23_v27  ;;  %v95_v44 = vmul.f32 %v381_v1, %v24_v28  ;;  %v36_v6 = vld [vmem:[%s961_s0 + $0xb0] sm:$0xff]  ;;  %v37_v11 = vld [vmem:[%s961_s0 + $0xb8] sm:$0xff] }
   0xa   :  { %287 = vst.msk [vmem:[%s964_s3 + $0x10] sm:$0xff] %vm284_vm0, %v222_v31  ;;  %288 = vst.msk [vmem:[%s964_s3 + $0x18] sm:$0xff] %vm284_vm0, %v223_v32  ;;  %v96_v45 = vmul.f32 %v381_v1, %v25_v29  ;;  %v164_v46 = vadd.f32 %v386_v2, %v93_v40  ;;  %v97_v47 = vmul.f32 %v381_v1, %v26_v34  ;;  %v38_v24 = vld [vmem:[%s961_s0 + $0xc0] sm:$0xff]  ;;  %v39_v29 = vld [vmem:[%s961_s0 + $0xc8] sm:$0xff] }
   0xb   :  { %289 = vst.msk [vmem:[%s964_s3 + $0x20] sm:$0xff] %vm284_vm0, %v224_v37  ;;  %290 = vst.msk [vmem:[%s964_s3 + $0x28] sm:$0xff] %vm284_vm0, %v225_v38  ;;  %v98_v48 = vmul.f32 %v381_v1, %v27_v35  ;;  %v99_v49 = vmul.f32 %v381_v1, %v28_v36  ;;  %v165_v50 = vadd.f32 %v386_v2, %v94_v43  ;;  %v40_v30 = vld [vmem:[%s961_s0 + $0xd0] sm:$0xff]  ;;  %v41_v31 = vld [vmem:[%s961_s0 + $0xd8] sm:$0xff] }
   0xc   :  { %291 = vst.msk [vmem:[%s964_s3 + $0x30] sm:$0xff] %vm284_vm0, %v226_v39  ;;  %292 = vst.msk [vmem:[%s964_s3 + $0x38] sm:$0xff] %vm284_vm0, %v227_v42  ;;  %v166_v51 = vadd.f32 %v386_v2, %v95_v44  ;;  %v167_v52 = vadd.f32 %v386_v2, %v96_v45  ;;  %v100_v53 = vmul.f32 %v381_v1, %v29_v41  ;;  %v228_v55 = vmax.f32 %v164_v46, 0.0  ;;  %v42_v36 = vld [vmem:[%s961_s0 + $0xe0] sm:$0xff]  ;;  %v43_v37 = vld [vmem:[%s961_s0 + $0xe8] sm:$0xff] }
   0xd   :  { %v168_v56 = vadd.f32 %v386_v2, %v97_v47  ;;  %v169_v57 = vadd.f32 %v386_v2, %v98_v48  ;;  %v170_v58 = vadd.f32 %v386_v2, %v99_v49  ;;  %v229_v62 = vmax.f32 %v165_v50, 0.0  ;;  %v44_v38 = vld [vmem:[%s961_s0 + $0xf0] sm:$0xff]  ;;  %v45_v43 = vld [vmem:[%s961_s0 + $0xf8] sm:$0xff] }
   0xe   :  { %v230_v63 = vmax.f32 %v166_v51, 0.0  ;;  %v231_v0 = vmax.f32 %v167_v52, 0.0  ;;  %v171_v3 = vadd.f32 %v386_v2, %v100_v53  ;;  %293 = vst.msk [vmem:[%s964_s3 + $0x40] sm:$0xff] %vm284_vm0, %v228_v55  ;;  %v101_v10 = vmul.f32 %v381_v1, %v30_v54 }
   0xf   :  { %v232_v7 = vmax.f32 %v168_v56, 0.0  ;;  %v233_v8 = vmax.f32 %v169_v57, 0.0  ;;  %v234_v9 = vmax.f32 %v170_v58, 0.0  ;;  %294 = vst.msk [vmem:[%s964_s3 + $0x48] sm:$0xff] %vm284_vm0, %v229_v62  ;;  %v102_v13 = vmul.f32 %v381_v1, %v31_v59  ;;  %v46_v56 = vld [vmem:[%s961_s0 + $0x100] sm:$0xff]  ;;  %v48_v62 = vld [vmem:[%s961_s0 + $0x110] sm:$0xff] }
  0x10   :  { %295 = vst.msk [vmem:[%s964_s3 + $0x50] sm:$0xff] %vm284_vm0, %v230_v63  ;;  %296 = vst.msk [vmem:[%s964_s3 + $0x58] sm:$0xff] %vm284_vm0, %v231_v0  ;;  %v235_v12 = vmax.f32 %v171_v3, 0.0  ;;  %v103_v14 = vmul.f32 %v381_v1, %v32_v60  ;;  %v104_v15 = vmul.f32 %v381_v1, %v33_v61  ;;  %v172_v16 = vadd.f32 %v386_v2, %v101_v10  ;;  %v47_v61 = vld [vmem:[%s961_s0 + $0x108] sm:$0xff]  ;;  %v49_v63 = vld [vmem:[%s961_s0 + $0x118] sm:$0xff] }
  0x11   :  { %297 = vst.msk [vmem:[%s964_s3 + $0x60] sm:$0xff] %vm284_vm0, %v232_v7  ;;  %298 = vst.msk [vmem:[%s964_s3 + $0x68] sm:$0xff] %vm284_vm0, %v233_v8  ;;  %v105_v17 = vmul.f32 %v381_v1, %v34_v4  ;;  %v106_v18 = vmul.f32 %v381_v1, %v35_v5  ;;  %v107_v19 = vmul.f32 %v381_v1, %v36_v6  ;;  %v50_v6 = vld [vmem:[%s961_s0 + $0x120] sm:$0xff]  ;;  %v51_v7 = vld [vmem:[%s961_s0 + $0x128] sm:$0xff] }
  0x12   :  { %299 = vst.msk [vmem:[%s964_s3 + $0x70] sm:$0xff] %vm284_vm0, %v234_v9  ;;  %300 = vst.msk [vmem:[%s964_s3 + $0x78] sm:$0xff] %vm284_vm0, %v235_v12  ;;  %v173_v20 = vadd.f32 %v386_v2, %v102_v13  ;;  %v174_v21 = vadd.f32 %v386_v2, %v103_v14  ;;  %v175_v22 = vadd.f32 %v386_v2, %v104_v15  ;;  %v236_v25 = vmax.f32 %v172_v16, 0.0  ;;  %v52_v8 = vld [vmem:[%s961_s0 + $0x130] sm:$0xff]  ;;  %v53_v13 = vld [vmem:[%s961_s0 + $0x138] sm:$0xff] }
  0x13   :  { %v108_v23 = vmul.f32 %v381_v1, %v37_v11  ;;  %v176_v26 = vadd.f32 %v386_v2, %v105_v17  ;;  %v177_v27 = vadd.f32 %v386_v2, %v106_v18  ;;  %v178_v28 = vadd.f32 %v386_v2, %v107_v19 }
  0x14   :  { %v237_v32 = vmax.f32 %v173_v20, 0.0  ;;  %v238_v33 = vmax.f32 %v174_v21, 0.0  ;;  %v239_v34 = vmax.f32 %v175_v22, 0.0  ;;  %301 = vst.msk [vmem:[%s964_s3 + $0x80] sm:$0xff] %vm284_vm0, %v236_v25  ;;  %v109_v42 = vmul.f32 %v381_v1, %v38_v24 }
  0x15   :  { %v179_v35 = vadd.f32 %v386_v2, %v108_v23  ;;  %v240_v39 = vmax.f32 %v176_v26, 0.0  ;;  %v241_v40 = vmax.f32 %v177_v27, 0.0  ;;  %v242_v41 = vmax.f32 %v178_v28, 0.0  ;;  %v54_v26 = vld [vmem:[%s961_s0 + $0x140] sm:$0xff] }
  0x16   :  { %302 = vst.msk [vmem:[%s964_s3 + $0x88] sm:$0xff] %vm284_vm0, %v237_v32  ;;  %303 = vst.msk [vmem:[%s964_s3 + $0x90] sm:$0xff] %vm284_vm0, %v238_v33  ;;  %v110_v45 = vmul.f32 %v381_v1, %v39_v29  ;;  %v111_v46 = vmul.f32 %v381_v1, %v40_v30  ;;  %v112_v47 = vmul.f32 %v381_v1, %v41_v31  ;;  %v55_v31 = vld [vmem:[%s961_s0 + $0x148] sm:$0xff]  ;;  %v56_v32 = vld [vmem:[%s961_s0 + $0x150] sm:$0xff] }
  0x17   :  { %304 = vst.msk [vmem:[%s964_s3 + $0x98] sm:$0xff] %vm284_vm0, %v239_v34  ;;  %v243_v44 = vmax.f32 %v179_v35, 0.0  ;;  %305 = vst.msk [vmem:[%s964_s3 + $0xa0] sm:$0xff] %vm284_vm0, %v240_v39  ;;  %v180_v48 = vadd.f32 %v386_v2, %v109_v42  ;;  %v113_v49 = vmul.f32 %v381_v1, %v42_v36  ;;  %v114_v50 = vmul.f32 %v381_v1, %v43_v37  ;;  %v57_v33 = vld [vmem:[%s961_s0 + $0x158] sm:$0xff]  ;;  %v59_v39 = vld [vmem:[%s961_s0 + $0x168] sm:$0xff] }
  0x18   :  { %306 = vst.msk [vmem:[%s964_s3 + $0xa8] sm:$0xff] %vm284_vm0, %v241_v40  ;;  %307 = vst.msk [vmem:[%s964_s3 + $0xb0] sm:$0xff] %vm284_vm0, %v242_v41  ;;  %v115_v51 = vmul.f32 %v381_v1, %v44_v38  ;;  %v181_v52 = vadd.f32 %v386_v2, %v110_v45  ;;  %v182_v53 = vadd.f32 %v386_v2, %v111_v46  ;;  %v58_v38 = vld [vmem:[%s961_s0 + $0x160] sm:$0xff]  ;;  %v60_v40 = vld [vmem:[%s961_s0 + $0x170] sm:$0xff] }
  0x19   :  { %308 = vst.msk [vmem:[%s964_s3 + $0xb8] sm:$0xff] %vm284_vm0, %v243_v44  ;;  %v183_v54 = vadd.f32 %v386_v2, %v112_v47  ;;  %v116_v55 = vmul.f32 %v381_v1, %v45_v43  ;;  %v244_v57 = vmax.f32 %v180_v48, 0.0  ;;  %v184_v58 = vadd.f32 %v386_v2, %v113_v49  ;;  %v61_v45 = vld [vmem:[%s961_s0 + $0x178] sm:$0xff] }
  0x1a   :  { %v185_v59 = vadd.f32 %v386_v2, %v114_v50  ;;  %v186_v60 = vadd.f32 %v386_v2, %v115_v51  ;;  %v245_v0 = vmax.f32 %v181_v52, 0.0  ;;  %v246_v3 = vmax.f32 %v182_v53, 0.0 }
  0x1b   :  { %v247_v4 = vmax.f32 %v183_v54, 0.0  ;;  %v187_v5 = vadd.f32 %v386_v2, %v116_v55  ;;  %309 = vst.msk [vmem:[%s964_s3 + $0xc0] sm:$0xff] %vm284_vm0, %v244_v57  ;;  %v248_v9 = vmax.f32 %v184_v58, 0.0  ;;  %v117_v12 = vmul.f32 %v381_v1, %v46_v56  ;;  %v62_v58 = vld [vmem:[%s961_s0 + $0x180] sm:$0xff] }
  0x1c   :  { %v249_v10 = vmax.f32 %v185_v59, 0.0  ;;  %v250_v11 = vmax.f32 %v186_v60, 0.0  ;;  %310 = vst.msk [vmem:[%s964_s3 + $0xc8] sm:$0xff] %vm284_vm0, %v245_v0  ;;  %311 = vst.msk [vmem:[%s964_s3 + $0xd0] sm:$0xff] %vm284_vm0, %v246_v3  ;;  %v118_v15 = vmul.f32 %v381_v1, %v47_v61  ;;  %v119_v16 = vmul.f32 %v381_v1, %v48_v62  ;;  %v64_v0 = vld [vmem:[%s961_s0 + $0x190] sm:$0xff]  ;;  %v65_v3 = vld [vmem:[%s961_s0 + $0x198] sm:$0xff] }
  0x1d   :  { %312 = vst.msk [vmem:[%s964_s3 + $0xd8] sm:$0xff] %vm284_vm0, %v247_v4  ;;  %v251_v14 = vmax.f32 %v187_v5, 0.0  ;;  %v120_v17 = vmul.f32 %v381_v1, %v49_v63  ;;  %313 = vst.msk [vmem:[%s964_s3 + $0xe0] sm:$0xff] %vm284_vm0, %v248_v9  ;;  %v188_v18 = vadd.f32 %v386_v2, %v117_v12  ;;  %v121_v19 = vmul.f32 %v381_v1, %v50_v6  ;;  %v63_v63 = vld [vmem:[%s961_s0 + $0x188] sm:$0xff] }
  0x1e   :  { %314 = vst.msk [vmem:[%s964_s3 + $0xe8] sm:$0xff] %vm284_vm0, %v249_v10  ;;  %315 = vst.msk [vmem:[%s964_s3 + $0xf0] sm:$0xff] %vm284_vm0, %v250_v11  ;;  %v122_v20 = vmul.f32 %v381_v1, %v51_v7  ;;  %v123_v21 = vmul.f32 %v381_v1, %v52_v8  ;;  %v189_v22 = vadd.f32 %v386_v2, %v118_v15  ;;  %v66_v8 = vld [vmem:[%s961_s0 + $0x1a0] sm:$0xff]  ;;  %v67_v9 = vld [vmem:[%s961_s0 + $0x1a8] sm:$0xff] }
  0x1f   :  { %316 = vst.msk [vmem:[%s964_s3 + $0xf8] sm:$0xff] %vm284_vm0, %v251_v14  ;;  %v190_v23 = vadd.f32 %v386_v2, %v119_v16  ;;  %v191_v24 = vadd.f32 %v386_v2, %v120_v17  ;;  %v124_v25 = vmul.f32 %v381_v1, %v53_v13  ;;  %v252_v27 = vmax.f32 %v188_v18, 0.0  ;;  %v68_v10 = vld [vmem:[%s961_s0 + $0x1b0] sm:$0xff]  ;;  %v69_v15 = vld [vmem:[%s961_s0 + $0x1b8] sm:$0xff] }
  0x20   :  { %v192_v28 = vadd.f32 %v386_v2, %v121_v19  ;;  %v193_v29 = vadd.f32 %v386_v2, %v122_v20  ;;  %v194_v30 = vadd.f32 %v386_v2, %v123_v21  ;;  %v253_v34 = vmax.f32 %v189_v22, 0.0 }
  0x21   :  { %v254_v35 = vmax.f32 %v190_v23, 0.0  ;;  %v255_v36 = vmax.f32 %v191_v24, 0.0  ;;  %v195_v37 = vadd.f32 %v386_v2, %v124_v25  ;;  %317 = vst.msk [vmem:[%s964_s3 + $0x100] sm:$0xff] %vm284_vm0, %v252_v27  ;;  %v125_v44 = vmul.f32 %v381_v1, %v54_v26 }
  0x22   :  { %v256_v41 = vmax.f32 %v192_v28, 0.0  ;;  %v257_v42 = vmax.f32 %v193_v29, 0.0  ;;  %v258_v43 = vmax.f32 %v194_v30, 0.0  ;;  %318 = vst.msk [vmem:[%s964_s3 + $0x108] sm:$0xff] %vm284_vm0, %v253_v34  ;;  %v126_v47 = vmul.f32 %v381_v1, %v55_v31  ;;  %v70_v28 = vld [vmem:[%s961_s0 + $0x1c0] sm:$0xff]  ;;  %v72_v34 = vld [vmem:[%s961_s0 + $0x1d0] sm:$0xff] }
  0x23   :  { %319 = vst.msk [vmem:[%s964_s3 + $0x110] sm:$0xff] %vm284_vm0, %v254_v35  ;;  %320 = vst.msk [vmem:[%s964_s3 + $0x118] sm:$0xff] %vm284_vm0, %v255_v36  ;;  %v259_v46 = vmax.f32 %v195_v37, 0.0  ;;  %v127_v48 = vmul.f32 %v381_v1, %v56_v32  ;;  %v128_v49 = vmul.f32 %v381_v1, %v57_v33  ;;  %v196_v50 = vadd.f32 %v386_v2, %v125_v44  ;;  %v71_v33 = vld [vmem:[%s961_s0 + $0x1c8] sm:$0xff]  ;;  %v73_v35 = vld [vmem:[%s961_s0 + $0x1d8] sm:$0xff] }
  0x24   :  { %321 = vst.msk [vmem:[%s964_s3 + $0x120] sm:$0xff] %vm284_vm0, %v256_v41  ;;  %322 = vst.msk [vmem:[%s964_s3 + $0x128] sm:$0xff] %vm284_vm0, %v257_v42  ;;  %v129_v51 = vmul.f32 %v381_v1, %v58_v38  ;;  %v130_v52 = vmul.f32 %v381_v1, %v59_v39  ;;  %v131_v53 = vmul.f32 %v381_v1, %v60_v40  ;;  %v74_v40 = vld [vmem:[%s961_s0 + $0x1e0] sm:$0xff]  ;;  %v75_v41 = vld [vmem:[%s961_s0 + $0x1e8] sm:$0xff] }
  0x25   :  { %323 = vst.msk [vmem:[%s964_s3 + $0x130] sm:$0xff] %vm284_vm0, %v258_v43  ;;  %324 = vst.msk [vmem:[%s964_s3 + $0x138] sm:$0xff] %vm284_vm0, %v259_v46  ;;  %v197_v54 = vadd.f32 %v386_v2, %v126_v47  ;;  %v198_v55 = vadd.f32 %v386_v2, %v127_v48  ;;  %v199_v56 = vadd.f32 %v386_v2, %v128_v49  ;;  %v260_v59 = vmax.f32 %v196_v50, 0.0  ;;  %v76_v42 = vld [vmem:[%s961_s0 + $0x1f0] sm:$0xff]  ;;  %v77_v47 = vld [vmem:[%s961_s0 + $0x1f8] sm:$0xff] }
  0x26   :  { %v132_v57 = vmul.f32 %v381_v1, %v61_v45  ;;  %v200_v60 = vadd.f32 %v386_v2, %v129_v51  ;;  %v201_v61 = vadd.f32 %v386_v2, %v130_v52  ;;  %v202_v62 = vadd.f32 %v386_v2, %v131_v53 }
  0x27   :  { %v261_v4 = vmax.f32 %v197_v54, 0.0  ;;  %v262_v5 = vmax.f32 %v198_v55, 0.0  ;;  %v263_v6 = vmax.f32 %v199_v56, 0.0  ;;  %325 = vst.msk [vmem:[%s964_s3 + $0x140] sm:$0xff] %vm284_vm0, %v260_v59  ;;  %v133_v14 = vmul.f32 %v381_v1, %v62_v58 }
  0x28   :  { %v203_v7 = vadd.f32 %v386_v2, %v132_v57  ;;  %v264_v11 = vmax.f32 %v200_v60, 0.0  ;;  %v265_v12 = vmax.f32 %v201_v61, 0.0  ;;  %v266_v13 = vmax.f32 %v202_v62, 0.0 }
  0x29   :  { %326 = vst.msk [vmem:[%s964_s3 + $0x148] sm:$0xff] %vm284_vm0, %v261_v4  ;;  %327 = vst.msk [vmem:[%s964_s3 + $0x150] sm:$0xff] %vm284_vm0, %v262_v5  ;;  %v134_v17 = vmul.f32 %v381_v1, %v63_v63  ;;  %v135_v18 = vmul.f32 %v381_v1, %v64_v0  ;;  %v136_v19 = vmul.f32 %v381_v1, %v65_v3 }
  0x2a   :  { %328 = vst.msk [vmem:[%s964_s3 + $0x158] sm:$0xff] %vm284_vm0, %v263_v6  ;;  %v267_v16 = vmax.f32 %v203_v7, 0.0  ;;  %329 = vst.msk [vmem:[%s964_s3 + $0x160] sm:$0xff] %vm284_vm0, %v264_v11  ;;  %v204_v20 = vadd.f32 %v386_v2, %v133_v14  ;;  %v137_v21 = vmul.f32 %v381_v1, %v66_v8  ;;  %v138_v22 = vmul.f32 %v381_v1, %v67_v9 }
  0x2b   :  { %330 = vst.msk [vmem:[%s964_s3 + $0x168] sm:$0xff] %vm284_vm0, %v265_v12  ;;  %331 = vst.msk [vmem:[%s964_s3 + $0x170] sm:$0xff] %vm284_vm0, %v266_v13  ;;  %v139_v23 = vmul.f32 %v381_v1, %v68_v10  ;;  %v205_v24 = vadd.f32 %v386_v2, %v134_v17  ;;  %v206_v25 = vadd.f32 %v386_v2, %v135_v18 }
  0x2c   :  { %332 = vst.msk [vmem:[%s964_s3 + $0x178] sm:$0xff] %vm284_vm0, %v267_v16  ;;  %v207_v26 = vadd.f32 %v386_v2, %v136_v19  ;;  %v140_v27 = vmul.f32 %v381_v1, %v69_v15  ;;  %v268_v29 = vmax.f32 %v204_v20, 0.0  ;;  %v208_v30 = vadd.f32 %v386_v2, %v137_v21 }
  0x2d   :  { %v209_v31 = vadd.f32 %v386_v2, %v138_v22  ;;  %v210_v32 = vadd.f32 %v386_v2, %v139_v23  ;;  %v269_v36 = vmax.f32 %v205_v24, 0.0  ;;  %v270_v37 = vmax.f32 %v206_v25, 0.0 }
  0x2e   :  { %v271_v38 = vmax.f32 %v207_v26, 0.0  ;;  %v211_v39 = vadd.f32 %v386_v2, %v140_v27  ;;  %333 = vst.msk [vmem:[%s964_s3 + $0x180] sm:$0xff] %vm284_vm0, %v268_v29  ;;  %v272_v43 = vmax.f32 %v208_v30, 0.0  ;;  %v141_v46 = vmul.f32 %v381_v1, %v70_v28 }
  0x2f   :  { %v273_v44 = vmax.f32 %v209_v31, 0.0  ;;  %v274_v45 = vmax.f32 %v210_v32, 0.0  ;;  %334 = vst.msk [vmem:[%s964_s3 + $0x188] sm:$0xff] %vm284_vm0, %v269_v36  ;;  %335 = vst.msk [vmem:[%s964_s3 + $0x190] sm:$0xff] %vm284_vm0, %v270_v37  ;;  %v142_v49 = vmul.f32 %v381_v1, %v71_v33  ;;  %v143_v50 = vmul.f32 %v381_v1, %v72_v34 }
  0x30   :  { %336 = vst.msk [vmem:[%s964_s3 + $0x198] sm:$0xff] %vm284_vm0, %v271_v38  ;;  %v275_v48 = vmax.f32 %v211_v39, 0.0  ;;  %v144_v51 = vmul.f32 %v381_v1, %v73_v35  ;;  %337 = vst.msk [vmem:[%s964_s3 + $0x1a0] sm:$0xff] %vm284_vm0, %v272_v43  ;;  %v212_v52 = vadd.f32 %v386_v2, %v141_v46  ;;  %v145_v53 = vmul.f32 %v381_v1, %v74_v40 }
  0x31   :  { %338 = vst.msk [vmem:[%s964_s3 + $0x1a8] sm:$0xff] %vm284_vm0, %v273_v44  ;;  %339 = vst.msk [vmem:[%s964_s3 + $0x1b0] sm:$0xff] %vm284_vm0, %v274_v45  ;;  %v146_v54 = vmul.f32 %v381_v1, %v75_v41  ;;  %v147_v55 = vmul.f32 %v381_v1, %v76_v42  ;;  %v213_v56 = vadd.f32 %v386_v2, %v142_v49 }
  0x32   :  { %340 = vst.msk [vmem:[%s964_s3 + $0x1b8] sm:$0xff] %vm284_vm0, %v275_v48  ;;  %v214_v57 = vadd.f32 %v386_v2, %v143_v50  ;;  %v215_v58 = vadd.f32 %v386_v2, %v144_v51  ;;  %v148_v59 = vmul.f32 %v381_v1, %v77_v47  ;;  %v276_v60 = vmax.f32 %v212_v52, 0.0 }
  0x33   :  { %v216_v61 = vadd.f32 %v386_v2, %v145_v53  ;;  %v217_v62 = vadd.f32 %v386_v2, %v146_v54  ;;  %v218_v63 = vadd.f32 %v386_v2, %v147_v55  ;;  %v277_v0 = vmax.f32 %v213_v56, 0.0 }
  0x34   :  { %v278_v3 = vmax.f32 %v214_v57, 0.0  ;;  %v279_v4 = vmax.f32 %v215_v58, 0.0  ;;  %v219_v5 = vadd.f32 %v386_v2, %v148_v59  ;;  %341 = vst.msk [vmem:[%s964_s3 + $0x1c0] sm:$0xff] %vm284_vm0, %v276_v60 }
  0x35   :  { %v280_v6 = vmax.f32 %v216_v61, 0.0  ;;  %v281_v7 = vmax.f32 %v217_v62, 0.0  ;;  %v282_v1 = vmax.f32 %v218_v63, 0.0  ;;  %342 = vst.msk [vmem:[%s964_s3 + $0x1c8] sm:$0xff] %vm284_vm0, %v277_v0 }
  0x36   :  { %343 = vst.msk [vmem:[%s964_s3 + $0x1d0] sm:$0xff] %vm284_vm0, %v278_v3  ;;  %344 = vst.msk [vmem:[%s964_s3 + $0x1d8] sm:$0xff] %vm284_vm0, %v279_v4  ;;  %v283_v2 = vmax.f32 %v219_v5, 0.0 }
  0x37   :  { %345 = vst.msk [vmem:[%s964_s3 + $0x1e0] sm:$0xff] %vm284_vm0, %v280_v6  ;;  %346 = vst.msk [vmem:[%s964_s3 + $0x1e8] sm:$0xff] %vm284_vm0, %v281_v7 }
  0x38   :  { %347 = vst.msk [vmem:[%s964_s3 + $0x1f0] sm:$0xff] %vm284_vm0, %v282_v1  ;;  %348 = vst.msk [vmem:[%s964_s3 + $0x1f8] sm:$0xff] %vm284_vm0, %v283_v2 }

</bundles_post_ra>
